<compile_context>
chip_gen: v6e
topology: v6e:2x2x1
jax: 0.10.0
libtpu: 0.0.40
codegen_flags: <defaults>
</compile_context>

<pallas_src>
import functools
import math

import jax
import jax.numpy as jnp
from jax.experimental import pallas as pl
from jax.experimental.pallas import tpu as pltpu


CFG = dict(
    vocab_size=100,
    max_position_embeddings=40,
    hidden_size=32,
    num_heads=2,
    num_layers=2,
    intermediate_size=64,
    cls_hidden=128,
    pad_token_id=1,
)


def _gelu(x):
    # exact (erf) GELU, as in RoBERTa
    return 0.5 * x * (1.0 + jax.lax.erf(x * 0.7071067811865476))


# ------------------------------- kernel -------------------------------------

def _model_kernel(emb_ref, mask_ref, wqkv_ref, wo_ref, wi_ref, wo2_ref,
                  lvec_ref, headw_ref, headvec_ref, out_ref, x_ref,
                  *, S, H, nH, Dh, I, C, L, eps):
    """One (batch row b, layer l) grid step of the RoBERTa discriminator."""
    l = pl.program_id(1)
    scale = 1.0 / math.sqrt(Dh)
    bf16 = jnp.bfloat16

    def layernorm(v, g, b):
        mean = jnp.mean(v, axis=-1, keepdims=True)
        cen = v - mean
        var = jnp.mean(cen * cen, axis=-1, keepdims=True)
        return cen * jax.lax.rsqrt(var + eps) * g + b

    # Layer 0: (re)initialize the residual stream = LayerNorm(embeddings).
    @pl.when(l == 0)
    def _init():
        x_ref[...] = layernorm(emb_ref[...],
                               headvec_ref[0:1, :H], headvec_ref[1:2, :H])

    x = x_ref[...]                       # (S, H) f32 residual stream
    mask = mask_ref[...]                 # (1, S) additive key mask (hoisted)

    # ---- multi-head self-attention: all heads fused into batched einsums ----
    qkv = jnp.dot(x.astype(bf16), wqkv_ref[...],
                  preferred_element_type=jnp.float32) + lvec_ref[0:1, :3 * H]

    def split_heads(a):                  # (S, H) -> (nH, S, Dh)
        return jnp.transpose(a.reshape(S, nH, Dh), (1, 0, 2))

    q = split_heads(qkv[:, 0:H])
    k = split_heads(qkv[:, H:2 * H])
    v = split_heads(qkv[:, 2 * H:3 * H])

    s = jnp.einsum('hqd,hkd->hqk', q.astype(bf16), k.astype(bf16),
                   preferred_element_type=jnp.float32) * scale + mask
    s = s - jnp.max(s, axis=-1, keepdims=True)
    p = jnp.exp(s)
    # approx reciprocal lands on the EUP slot; ~2^-12 rel. error vs exact divide
    p = p * pl.reciprocal(jnp.sum(p, axis=-1, keepdims=True), approx=True)
    ctx = jnp.einsum('hqk,hkd->hqd', p.astype(bf16), v.astype(bf16),
                     preferred_element_type=jnp.float32)      # (nH, S, Dh)
    ctx = jnp.transpose(ctx, (1, 0, 2)).reshape(S, H)

    attn = jnp.dot(ctx.astype(bf16), wo_ref[...],
                   preferred_element_type=jnp.float32) + lvec_ref[1:2, :H]
    x = layernorm(attn + x, lvec_ref[2:3, :H], lvec_ref[3:4, :H])

    # ---- GELU FFN ----
    inter = _gelu(jnp.dot(x.astype(bf16), wi_ref[...],
                          preferred_element_type=jnp.float32)
                  + lvec_ref[4:5, :I])
    ffn = jnp.dot(inter.astype(bf16), wo2_ref[...],
                  preferred_element_type=jnp.float32) + lvec_ref[5:6, :H]
    x = layernorm(ffn + x, lvec_ref[6:7, :H], lvec_ref[7:8, :H])
    x_ref[...] = x

    # Last layer: pooler (tanh on CLS token) + classifier head; lane-dense out.
    @pl.when(l == L - 1)
    def _head():
        cls = x[0:1, :]                                        # (1, H)
        pooled = jnp.tanh(
            jnp.dot(cls.astype(bf16), headw_ref[:, C:C + H],
                    preferred_element_type=jnp.float32) + headvec_ref[2:3, :H])
        h1 = jnp.maximum(
            jnp.dot(pooled.astype(bf16), headw_ref[:, 0:C],
                    preferred_element_type=jnp.float32) + headvec_ref[3:4, :C],
            0.0)                                               # (1, C)
        logit = (jnp.sum(h1 * headvec_ref[4:5, :C], axis=-1, keepdims=True)
                 + headvec_ref[5:6, 0:1])                      # (1, 1)
        out_ref[...] = jnp.broadcast_to(jax.nn.sigmoid(logit), out_ref.shape)


# ---------------------------- model definition ------------------------------

def init_params(key, cfg):
    H = cfg["hidden_size"]
    I = cfg["intermediate_size"]
    C = cfg["cls_hidden"]
    L = cfg["num_layers"]
    std = 0.02

    def nrm(k, shape):
        return jax.random.normal(k, shape, jnp.float32) * std

    keys = iter(jax.random.split(key, 32))
    return {
        "word_emb": nrm(next(keys), (cfg["vocab_size"], H)),
        "pos_emb": nrm(next(keys), (cfg["max_position_embeddings"], H)),
        "type_emb": nrm(next(keys), (1, H)),
        "emb_ln_g": jnp.ones((1, H), jnp.float32),
        "emb_ln_b": jnp.zeros((1, H), jnp.float32),
        # Per-layer weights stacked along a leading L axis; QKV fused to (H,3H).
        "wqkv": nrm(next(keys), (L, H, 3 * H)),
        "bqkv": jnp.zeros((L, 1, 3 * H), jnp.float32),
        "wo": nrm(next(keys), (L, H, H)),
        "bo": jnp.zeros((L, 1, H), jnp.float32),
        "ln1_g": jnp.ones((L, 1, H), jnp.float32),
        "ln1_b": jnp.zeros((L, 1, H), jnp.float32),
        "wi": nrm(next(keys), (L, H, I)),
        "bi": jnp.zeros((L, 1, I), jnp.float32),
        "wo2": nrm(next(keys), (L, I, H)),
        "bo2": jnp.zeros((L, 1, H), jnp.float32),
        "ln2_g": jnp.ones((L, 1, H), jnp.float32),
        "ln2_b": jnp.zeros((L, 1, H), jnp.float32),
        "pool_w": nrm(next(keys), (H, H)),
        "pool_b": jnp.zeros((1, H), jnp.float32),
        "cls_w1": nrm(next(keys), (H, C)),
        "cls_b1": jnp.zeros((1, C), jnp.float32),
        "cls_w2": nrm(next(keys), (C, 1)),
        "cls_b2": jnp.zeros((1, 1), jnp.float32),
    }


def pack_params(params, cfg):
    """Consolidate the 22 tensors into 9 kernel inputs; bf16 GEMM weights."""
    H = cfg["hidden_size"]
    I = cfg["intermediate_size"]
    C = cfg["cls_hidden"]
    P = max(3 * H, I)

    def lrow(v):                               # (L, 1, w) -> (L, P), zero-padded
        v2 = v[:, 0, :]
        return jnp.pad(v2, ((0, 0), (0, P - v2.shape[1])))

    # Per-layer small vectors: rows = [bqkv, bo, ln1_g, ln1_b, bi, bo2, ln2_g, ln2_b]
    lvec = jnp.stack([lrow(params["bqkv"]), lrow(params["bo"]),
                      lrow(params["ln1_g"]), lrow(params["ln1_b"]),
                      lrow(params["bi"]), lrow(params["bo2"]),
                      lrow(params["ln2_g"]), lrow(params["ln2_b"])], axis=1)

    def hrow(v):                               # flatten + pad to C lanes
        v = v.reshape(-1).astype(jnp.float32)
        return jnp.pad(v, (0, C - v.shape[0]))

    # Head/emb vectors: rows = [emb_ln_g, emb_ln_b, pool_b, cls_b1, cls_w2, cls_b2, 0, 0]
    head_vec = jnp.stack([hrow(params["emb_ln_g"]), hrow(params["emb_ln_b"]),
                          hrow(params["pool_b"]), hrow(params["cls_b1"]),
                          hrow(params["cls_w2"]), hrow(params["cls_b2"]),
                          jnp.zeros((C,), jnp.float32),
                          jnp.zeros((C,), jnp.float32)], axis=0)

    # Head matrices packed lane-wise: [cls_w1 | pool_w] -> (H, C + H)
    head_w = jnp.concatenate([params["cls_w1"], params["pool_w"]],
                             axis=1).astype(jnp.bfloat16)

    return dict(
        word_emb=params["word_emb"], pos_emb=params["pos_emb"],
        type_emb=params["type_emb"],
        wqkv=params["wqkv"].astype(jnp.bfloat16),
        wo=params["wo"].astype(jnp.bfloat16),
        wi=params["wi"].astype(jnp.bfloat16),
        wo2=params["wo2"].astype(jnp.bfloat16),
        lvec=lvec, head_w=head_w, head_vec=head_vec)


def roberta_discriminator_forward(packed, input_ids, attention_mask, cfg=CFG):
    B, S = input_ids.shape
    H = cfg["hidden_size"]
    nH = cfg["num_heads"]
    Dh = H // nH
    I = cfg["intermediate_size"]
    C = cfg["cls_hidden"]
    L = cfg["num_layers"]
    pad = cfg["pad_token_id"]
    P = max(3 * H, I)

    # ---- embeddings (data-dependent gathers stay in plain JAX) ----
    mask_f = attention_mask.astype(jnp.float32)
    position_ids = jnp.cumsum(attention_mask, axis=1) * attention_mask + pad
    emb = (packed["word_emb"][input_ids]
           + packed["pos_emb"][position_ids]
           + packed["type_emb"][jnp.zeros_like(input_ids)])       # (B, S, H)
    mask_add = ((1.0 - mask_f) * -1e9)[:, None, :]                # (B, 1, S)

    kernel = functools.partial(_model_kernel, S=S, H=H, nH=nH, Dh=Dh,
                               I=I, C=C, L=L, eps=1e-5)

    grid_spec = pltpu.PrefetchScalarGridSpec(
        num_scalar_prefetch=0,
        grid=(B, L),     # batch rows "parallel" (v7x 2 TCs), layers "arbitrary"
        in_specs=[
            pl.BlockSpec((None, S, H), lambda b, l: (b, 0, 0)),      # embeddings
            pl.BlockSpec((None, 1, S), lambda b, l: (b, 0, 0)),      # additive mask
            pl.BlockSpec((None, H, 3 * H), lambda b, l: (l, 0, 0)),  # fused QKV weight
            pl.BlockSpec((None, H, H), lambda b, l: (l, 0, 0)),      # attn out weight
            pl.BlockSpec((None, H, I), lambda b, l: (l, 0, 0)),      # FFN in weight
            pl.BlockSpec((None, I, H), lambda b, l: (l, 0, 0)),      # FFN out weight
            pl.BlockSpec((None, 8, P), lambda b, l: (l, 0, 0)),      # packed layer vecs
            pl.BlockSpec((H, C + H), lambda b, l: (0, 0)),           # packed head weights
            pl.BlockSpec((8, C), lambda b, l: (0, 0)),               # packed head vectors
        ],
        out_specs=pl.BlockSpec((None, 1, C), lambda b, l: (b, 0, 0)),
        scratch_shapes=[pltpu.VMEM((S, H), jnp.float32)],            # residual stream
    )

    out = pl.pallas_call(
        kernel,
        out_shape=jax.ShapeDtypeStruct((B, 1, C), jnp.float32),
        grid_spec=grid_spec,
        compiler_params=pltpu.CompilerParams(
            dimension_semantics=("parallel", "arbitrary"),
            vmem_limit_bytes=32 * 1024 * 1024),
    )(emb, mask_add, packed["wqkv"], packed["wo"], packed["wi"], packed["wo2"],
      packed["lvec"], packed["head_w"], packed["head_vec"])

    return out[:, 0, :1]                                             # (B, 1)


# ------------------------- pure-JAX f32 reference ---------------------------

def reference_forward(params, input_ids, attention_mask, cfg=CFG):
    B, S = input_ids.shape
    H = cfg["hidden_size"]
    nH = cfg["num_heads"]
    Dh = H // nH
    L = cfg["num_layers"]
    pad = cfg["pad_token_id"]
    eps = 1e-5

    def ln(v, g, b):
        m = jnp.mean(v, axis=-1, keepdims=True)
        c = v - m
        return c * jax.lax.rsqrt(jnp.mean(c * c, -1, keepdims=True) + eps) * g + b

    mask_f = attention_mask.astype(jnp.float32)
    position_ids = jnp.cumsum(attention_mask, axis=1) * attention_mask + pad
    x = (params["word_emb"][input_ids] + params["pos_emb"][position_ids]
         + params["type_emb"][jnp.zeros_like(input_ids)])
    x = ln(x, params["emb_ln_g"], params["emb_ln_b"])
    mask_add = ((1.0 - mask_f) * -1e9)[:, None, None, :]

    def split_heads(a):
        return jnp.transpose(a.reshape(B, S, nH, Dh), (0, 2, 1, 3))

    for l in range(L):
        qkv = x @ params["wqkv"][l] + params["bqkv"][l]
        q = split_heads(qkv[..., :H])
        k = split_heads(qkv[..., H:2 * H])
        v = split_heads(qkv[..., 2 * H:])
        s = jnp.einsum('bhqd,bhkd->bhqk', q, k) / math.sqrt(Dh) + mask_add
        p = jax.nn.softmax(s, axis=-1)
        ctx = jnp.einsum('bhqk,bhkd->bhqd', p, v)
        ctx = jnp.transpose(ctx, (0, 2, 1, 3)).reshape(B, S, H)
        x = ln(ctx @ params["wo"][l] + params["bo"][l] + x,
               params["ln1_g"][l], params["ln1_b"][l])
        inter = _gelu(x @ params["wi"][l] + params["bi"][l])
        x = ln(inter @ params["wo2"][l] + params["bo2"][l] + x,
               params["ln2_g"][l], params["ln2_b"][l])

    pooled = jnp.tanh(x[:, 0, :] @ params["pool_w"] + params["pool_b"])
    h1 = jnp.maximum(pooled @ params["cls_w1"] + params["cls_b1"], 0.0)
    return jax.nn.sigmoid(h1 @ params["cls_w2"] + params["cls_b2"])


# --------------------------------- main --------------------------------------

if __name__ == "__main__":
    key = jax.random.PRNGKey(0)
    pkey, ikey = jax.random.split(key)

    params = init_params(pkey, CFG)
    packed = pack_params(params, CFG)

    B, S = 2, 8
    input_ids = jax.random.randint(ikey, (B, S), 2, CFG["vocab_size"],
                                   dtype=jnp.int32)
    attention_mask = jnp.ones((B, S), dtype=jnp.int32)
    attention_mask = attention_mask.at[1, 6:].set(0)   # exercise padding mask

    probs = roberta_discriminator_forward(packed, input_ids, attention_mask)
    probs = jax.block_until_ready(probs)
    ref = reference_forward(params, input_ids, attention_mask)

    assert probs.shape == (B, 1)
    assert bool(jnp.all(jnp.isfinite(probs)))
    assert bool(jnp.all((probs >= 0.0) & (probs <= 1.0)))
    assert bool(jnp.allclose(probs, ref, atol=2e-2)), (probs, ref)
    print("KERNEL_OK")
</pallas_src>

<mosaic_0001>
module attributes {stable_mosaic.version = 11 : i64} {
  func.func @_model_kernel(%arg0: i32, %arg1: i32, %arg2: memref<1x8x32xf32, #tpu.memory_space<vmem>>, %arg3: memref<1x1x8xf32, #tpu.memory_space<vmem>>, %arg4: memref<1x32x96xbf16, #tpu.memory_space<vmem>>, %arg5: memref<1x32x32xbf16, #tpu.memory_space<vmem>>, %arg6: memref<1x32x64xbf16, #tpu.memory_space<vmem>>, %arg7: memref<1x64x32xbf16, #tpu.memory_space<vmem>>, %arg8: memref<1x8x96xf32, #tpu.memory_space<vmem>>, %arg9: memref<32x160xbf16, #tpu.memory_space<vmem>>, %arg10: memref<8x128xf32, #tpu.memory_space<vmem>>, %arg11: memref<1x1x128xf32, #tpu.memory_space<vmem>>, %arg12: memref<8x32xf32, #tpu.memory_space<vmem>>) attributes {dimension_semantics = [#tpu.dimension_semantics<parallel>, #tpu.dimension_semantics<arbitrary>], iteration_bounds = array<i64: 2, 2>, scalar_prefetch = 0 : i64, scratch_operands = 1 : i64, tpu.core_type = #tpu.core_type<tc>, window_params = [{transform_indices = @transform_0, window_bounds = array<i64: 1, 8, 32>}, {transform_indices = @transform_1, window_bounds = array<i64: 1, 1, 8>}, {transform_indices = @transform_2, window_bounds = array<i64: 1, 32, 96>}, {transform_indices = @transform_3, window_bounds = array<i64: 1, 32, 32>}, {transform_indices = @transform_4, window_bounds = array<i64: 1, 32, 64>}, {transform_indices = @transform_5, window_bounds = array<i64: 1, 64, 32>}, {transform_indices = @transform_6, window_bounds = array<i64: 1, 8, 96>}, {pipeline_mode = #tpu.pipeline_mode<synchronous>, transform_indices = @transform_7, window_bounds = array<i64: 32, 160>}, {pipeline_mode = #tpu.pipeline_mode<synchronous>, transform_indices = @transform_8, window_bounds = array<i64: 8, 128>}, {transform_indices = @transform_9, window_bounds = array<i64: 1, 1, 128>}]} {
    %c0_i32 = arith.constant 0 : i32
    %0 = arith.cmpi eq, %arg1, %c0_i32 : i32
    %1 = arith.extui %0 : i1 to i32
    %c0_i32_0 = arith.constant 0 : i32
    %2 = arith.cmpi ne, %1, %c0_i32_0 : i32
    scf.if %2 {
      %c0_58 = arith.constant 0 : index
      %c0_59 = arith.constant 0 : index
      %c0_60 = arith.constant 0 : index
      %132 = vector.load %arg2[%c0_58, %c0_59, %c0_60] : memref<1x8x32xf32, #tpu.memory_space<vmem>>, vector<1x8x32xf32>
      %133 = vector.shape_cast %132 : vector<1x8x32xf32> to vector<8x32xf32>
      %c0_61 = arith.constant 0 : index
      %c0_62 = arith.constant 0 : index
      %134 = vector.load %arg10[%c0_61, %c0_62] : memref<8x128xf32, #tpu.memory_space<vmem>>, vector<1x32xf32>
      %c1_63 = arith.constant 1 : index
      %c0_64 = arith.constant 0 : index
      %135 = vector.load %arg10[%c1_63, %c0_64] : memref<8x128xf32, #tpu.memory_space<vmem>>, vector<1x32xf32>
      %cst_65 = arith.constant dense<0.000000e+00> : vector<8xf32>
      %136 = vector.multi_reduction <add>, %133, %cst_65 [1] : vector<8x32xf32> to vector<8xf32>
      %137 = vector.shape_cast %136 : vector<8xf32> to vector<8x1xf32>
      %cst_66 = arith.constant 3.200000e+01 : f32
      %138 = vector.broadcast %cst_66 : f32 to vector<8x1xf32>
      %139 = arith.divf %137, %138 : vector<8x1xf32>
      %140 = vector.broadcast %139 : vector<8x1xf32> to vector<8x32xf32>
      %141 = arith.subf %133, %140 : vector<8x32xf32>
      %142 = arith.mulf %141, %141 : vector<8x32xf32>
      %cst_67 = arith.constant dense<0.000000e+00> : vector<8xf32>
      %143 = vector.multi_reduction <add>, %142, %cst_67 [1] : vector<8x32xf32> to vector<8xf32>
      %144 = vector.shape_cast %143 : vector<8xf32> to vector<8x1xf32>
      %cst_68 = arith.constant 3.200000e+01 : f32
      %145 = vector.broadcast %cst_68 : f32 to vector<8x1xf32>
      %146 = arith.divf %144, %145 : vector<8x1xf32>
      %cst_69 = arith.constant 9.99999974E-6 : f32
      %147 = vector.broadcast %cst_69 : f32 to vector<8x1xf32>
      %148 = arith.addf %146, %147 : vector<8x1xf32>
      %149 = math.rsqrt %148 : vector<8x1xf32>
      %150 = vector.broadcast %149 : vector<8x1xf32> to vector<8x32xf32>
      %151 = arith.mulf %141, %150 : vector<8x32xf32>
      %152 = vector.broadcast %134 : vector<1x32xf32> to vector<8x32xf32>
      %153 = arith.mulf %151, %152 : vector<8x32xf32>
      %154 = vector.broadcast %135 : vector<1x32xf32> to vector<8x32xf32>
      %155 = arith.addf %153, %154 : vector<8x32xf32>
      %c0_70 = arith.constant 0 : index
      %c0_71 = arith.constant 0 : index
      %156 = vector.load %arg12[%c0_70, %c0_71] : memref<8x32xf32, #tpu.memory_space<vmem>>, vector<8x32xf32>
      tpu.vector_store %arg12[%c0_70, %c0_71], %155 {strides = array<i32>} : memref<8x32xf32, #tpu.memory_space<vmem>>, vector<8x32xf32>,
    } else {
    }
    %c0 = arith.constant 0 : index
    %c0_1 = arith.constant 0 : index
    %3 = vector.load %arg12[%c0, %c0_1] : memref<8x32xf32, #tpu.memory_space<vmem>>, vector<8x32xf32>
    %c0_2 = arith.constant 0 : index
    %c0_3 = arith.constant 0 : index
    %c0_4 = arith.constant 0 : index
    %4 = vector.load %arg3[%c0_2, %c0_3, %c0_4] : memref<1x1x8xf32, #tpu.memory_space<vmem>>, vector<1x1x8xf32>
    %5 = vector.shape_cast %4 : vector<1x1x8xf32> to vector<1x8xf32>
    %6 = arith.truncf %3 : vector<8x32xf32> to vector<8x32xbf16>
    %c0_5 = arith.constant 0 : index
    %c0_6 = arith.constant 0 : index
    %c0_7 = arith.constant 0 : index
    %7 = vector.load %arg4[%c0_5, %c0_6, %c0_7] : memref<1x32x96xbf16, #tpu.memory_space<vmem>>, vector<1x32x96xbf16>
    %8 = vector.shape_cast %7 : vector<1x32x96xbf16> to vector<32x96xbf16>
    %cst = arith.constant dense<0.000000e+00> : vector<8x96xf32>
    %9 = tpu.matmul %6, %8, %cst {dimension_numbers = #tpu.dot_dimension_numbers<[1], [0], [0], [1], [0, 0, 1, 1], [], []>} : vector<8x32xbf16>, vector<32x96xbf16>, vector<8x96xf32> -> vector<8x96xf32>
    %c0_8 = arith.constant 0 : index
    %c0_9 = arith.constant 0 : index
    %c0_10 = arith.constant 0 : index
    %10 = vector.load %arg8[%c0_8, %c0_9, %c0_10] : memref<1x8x96xf32, #tpu.memory_space<vmem>>, vector<1x1x96xf32>
    %11 = vector.shape_cast %10 : vector<1x1x96xf32> to vector<1x96xf32>
    %12 = vector.broadcast %11 : vector<1x96xf32> to vector<8x96xf32>
    %13 = arith.addf %9, %12 : vector<8x96xf32>
    %14 = vector.extract_strided_slice %13 {offsets = [0, 0], sizes = [8, 32], strides = [1, 1]} : vector<8x96xf32> to vector<8x32xf32>
    %15 = vector.shape_cast %14 : vector<8x32xf32> to vector<8x2x16xf32>
    %16 = tpu.transpose %15, [1, 0, 2] : vector<8x2x16xf32> -> vector<2x8x16xf32>
    %17 = vector.extract_strided_slice %13 {offsets = [0, 32], sizes = [8, 32], strides = [1, 1]} : vector<8x96xf32> to vector<8x32xf32>
    %18 = vector.shape_cast %17 : vector<8x32xf32> to vector<8x2x16xf32>
    %19 = tpu.transpose %18, [1, 0, 2] : vector<8x2x16xf32> -> vector<2x8x16xf32>
    %20 = vector.extract_strided_slice %13 {offsets = [0, 64], sizes = [8, 32], strides = [1, 1]} : vector<8x96xf32> to vector<8x32xf32>
    %21 = vector.shape_cast %20 : vector<8x32xf32> to vector<8x2x16xf32>
    %22 = tpu.transpose %21, [1, 0, 2] : vector<8x2x16xf32> -> vector<2x8x16xf32>
    %23 = arith.truncf %16 : vector<2x8x16xf32> to vector<2x8x16xbf16>
    %24 = arith.truncf %19 : vector<2x8x16xf32> to vector<2x8x16xbf16>
    "tpu.trace_start"() <{level = 10 : i32, message = "hqd,hkd->hqk"}> : () -> ()
    %cst_11 = arith.constant dense<0.000000e+00> : vector<2x8x8xf32>
    %25 = tpu.matmul %23, %24, %cst_11 {dimension_numbers = #tpu.dot_dimension_numbers<[2], [2], [1], [1], [0, 0, 0, 1, 1, 1], [0], [0]>} : vector<2x8x16xbf16>, vector<2x8x16xbf16>, vector<2x8x8xf32> -> vector<2x8x8xf32>
    "tpu.trace_stop"() : () -> ()
    %cst_12 = arith.constant 2.500000e-01 : f32
    %26 = vector.broadcast %cst_12 : f32 to vector<2x8x8xf32>
    %27 = arith.mulf %25, %26 : vector<2x8x8xf32>
    %28 = vector.shape_cast %5 : vector<1x8xf32> to vector<1x1x8xf32>
    %29 = vector.broadcast %28 : vector<1x1x8xf32> to vector<2x8x8xf32>
    %30 = arith.addf %27, %29 : vector<2x8x8xf32>
    %cst_13 = arith.constant dense<0xFF800000> : vector<2x8xf32>
    %31 = vector.multi_reduction <maximumf>, %30, %cst_13 [2] : vector<2x8x8xf32> to vector<2x8xf32>
    %32 = vector.shape_cast %31 : vector<2x8xf32> to vector<2x8x1xf32>
    %33 = vector.broadcast %32 : vector<2x8x1xf32> to vector<2x8x8xf32>
    %34 = arith.subf %30, %33 : vector<2x8x8xf32>
    %35 = math.exp %34 : vector<2x8x8xf32>
    %cst_14 = arith.constant dense<0.000000e+00> : vector<2x8xf32>
    %36 = vector.multi_reduction <add>, %35, %cst_14 [2] : vector<2x8x8xf32> to vector<2x8xf32>
    %37 = vector.shape_cast %36 : vector<2x8xf32> to vector<2x8x1xf32>
    %38 = tpu.reciprocal %37 {approx = true} : vector<2x8x1xf32> -> vector<2x8x1xf32>
    %39 = vector.broadcast %38 : vector<2x8x1xf32> to vector<2x8x8xf32>
    %40 = arith.mulf %35, %39 : vector<2x8x8xf32>
    %41 = arith.truncf %40 : vector<2x8x8xf32> to vector<2x8x8xbf16>
    %42 = arith.truncf %22 : vector<2x8x16xf32> to vector<2x8x16xbf16>
    "tpu.trace_start"() <{level = 10 : i32, message = "hqk,hkd->hqd"}> : () -> ()
    %cst_15 = arith.constant dense<0.000000e+00> : vector<2x8x16xf32>
    %43 = tpu.matmul %41, %42, %cst_15 {dimension_numbers = #tpu.dot_dimension_numbers<[2], [1], [1], [2], [0, 0, 0, 1, 1, 2], [0], [0]>} : vector<2x8x8xbf16>, vector<2x8x16xbf16>, vector<2x8x16xf32> -> vector<2x8x16xf32>
    "tpu.trace_stop"() : () -> ()
    %44 = tpu.transpose %43, [1, 0, 2] : vector<2x8x16xf32> -> vector<8x2x16xf32>
    %45 = vector.shape_cast %44 : vector<8x2x16xf32> to vector<8x32xf32>
    %46 = arith.truncf %45 : vector<8x32xf32> to vector<8x32xbf16>
    %c0_16 = arith.constant 0 : index
    %c0_17 = arith.constant 0 : index
    %c0_18 = arith.constant 0 : index
    %47 = vector.load %arg5[%c0_16, %c0_17, %c0_18] : memref<1x32x32xbf16, #tpu.memory_space<vmem>>, vector<1x32x32xbf16>
    %48 = vector.shape_cast %47 : vector<1x32x32xbf16> to vector<32x32xbf16>
    %cst_19 = arith.constant dense<0.000000e+00> : vector<8x32xf32>
    %49 = tpu.matmul %46, %48, %cst_19 {dimension_numbers = #tpu.dot_dimension_numbers<[1], [0], [0], [1], [0, 0, 1, 1], [], []>} : vector<8x32xbf16>, vector<32x32xbf16>, vector<8x32xf32> -> vector<8x32xf32>
    %c0_20 = arith.constant 0 : index
    %c1 = arith.constant 1 : index
    %c0_21 = arith.constant 0 : index
    %50 = vector.load %arg8[%c0_20, %c1, %c0_21] : memref<1x8x96xf32, #tpu.memory_space<vmem>>, vector<1x1x32xf32>
    %51 = vector.shape_cast %50 : vector<1x1x32xf32> to vector<1x32xf32>
    %52 = vector.broadcast %51 : vector<1x32xf32> to vector<8x32xf32>
    %53 = arith.addf %49, %52 : vector<8x32xf32>
    %54 = arith.addf %53, %3 : vector<8x32xf32>
    %c0_22 = arith.constant 0 : index
    %c2 = arith.constant 2 : index
    %c0_23 = arith.constant 0 : index
    %55 = vector.load %arg8[%c0_22, %c2, %c0_23] : memref<1x8x96xf32, #tpu.memory_space<vmem>>, vector<1x1x32xf32>
    %56 = vector.shape_cast %55 : vector<1x1x32xf32> to vector<1x32xf32>
    %c0_24 = arith.constant 0 : index
    %c3 = arith.constant 3 : index
    %c0_25 = arith.constant 0 : index
    %57 = vector.load %arg8[%c0_24, %c3, %c0_25] : memref<1x8x96xf32, #tpu.memory_space<vmem>>, vector<1x1x32xf32>
    %58 = vector.shape_cast %57 : vector<1x1x32xf32> to vector<1x32xf32>
    %cst_26 = arith.constant dense<0.000000e+00> : vector<8xf32>
    %59 = vector.multi_reduction <add>, %54, %cst_26 [1] : vector<8x32xf32> to vector<8xf32>
    %60 = vector.shape_cast %59 : vector<8xf32> to vector<8x1xf32>
    %cst_27 = arith.constant 3.200000e+01 : f32
    %61 = vector.broadcast %cst_27 : f32 to vector<8x1xf32>
    %62 = arith.divf %60, %61 : vector<8x1xf32>
    %63 = vector.broadcast %62 : vector<8x1xf32> to vector<8x32xf32>
    %64 = arith.subf %54, %63 : vector<8x32xf32>
    %65 = arith.mulf %64, %64 : vector<8x32xf32>
    %cst_28 = arith.constant dense<0.000000e+00> : vector<8xf32>
    %66 = vector.multi_reduction <add>, %65, %cst_28 [1] : vector<8x32xf32> to vector<8xf32>
    %67 = vector.shape_cast %66 : vector<8xf32> to vector<8x1xf32>
    %cst_29 = arith.constant 3.200000e+01 : f32
    %68 = vector.broadcast %cst_29 : f32 to vector<8x1xf32>
    %69 = arith.divf %67, %68 : vector<8x1xf32>
    %cst_30 = arith.constant 9.99999974E-6 : f32
    %70 = vector.broadcast %cst_30 : f32 to vector<8x1xf32>
    %71 = arith.addf %69, %70 : vector<8x1xf32>
    %72 = math.rsqrt %71 : vector<8x1xf32>
    %73 = vector.broadcast %72 : vector<8x1xf32> to vector<8x32xf32>
    %74 = arith.mulf %64, %73 : vector<8x32xf32>
    %75 = vector.broadcast %56 : vector<1x32xf32> to vector<8x32xf32>
    %76 = arith.mulf %74, %75 : vector<8x32xf32>
    %77 = vector.broadcast %58 : vector<1x32xf32> to vector<8x32xf32>
    %78 = arith.addf %76, %77 : vector<8x32xf32>
    %79 = arith.truncf %78 : vector<8x32xf32> to vector<8x32xbf16>
    %c0_31 = arith.constant 0 : index
    %c0_32 = arith.constant 0 : index
    %c0_33 = arith.constant 0 : index
    %80 = vector.load %arg6[%c0_31, %c0_32, %c0_33] : memref<1x32x64xbf16, #tpu.memory_space<vmem>>, vector<1x32x64xbf16>
    %81 = vector.shape_cast %80 : vector<1x32x64xbf16> to vector<32x64xbf16>
    %cst_34 = arith.constant dense<0.000000e+00> : vector<8x64xf32>
    %82 = tpu.matmul %79, %81, %cst_34 {dimension_numbers = #tpu.dot_dimension_numbers<[1], [0], [0], [1], [0, 0, 1, 1], [], []>} : vector<8x32xbf16>, vector<32x64xbf16>, vector<8x64xf32> -> vector<8x64xf32>
    %c0_35 = arith.constant 0 : index
    %c4 = arith.constant 4 : index
    %c0_36 = arith.constant 0 : index
    %83 = vector.load %arg8[%c0_35, %c4, %c0_36] : memref<1x8x96xf32, #tpu.memory_space<vmem>>, vector<1x1x64xf32>
    %84 = vector.shape_cast %83 : vector<1x1x64xf32> to vector<1x64xf32>
    %85 = vector.broadcast %84 : vector<1x64xf32> to vector<8x64xf32>
    %86 = arith.addf %82, %85 : vector<8x64xf32>
    %cst_37 = arith.constant 5.000000e-01 : f32
    %87 = vector.broadcast %cst_37 : f32 to vector<8x64xf32>
    %88 = arith.mulf %87, %86 : vector<8x64xf32>
    %cst_38 = arith.constant 0.707106769 : f32
    %89 = vector.broadcast %cst_38 : f32 to vector<8x64xf32>
    %90 = arith.mulf %86, %89 : vector<8x64xf32>
    %91 = math.erf %90 : vector<8x64xf32>
    %cst_39 = arith.constant 1.000000e+00 : f32
    %92 = vector.broadcast %cst_39 : f32 to vector<8x64xf32>
    %93 = arith.addf %92, %91 : vector<8x64xf32>
    %94 = arith.mulf %88, %93 : vector<8x64xf32>
    %95 = arith.truncf %94 : vector<8x64xf32> to vector<8x64xbf16>
    %c0_40 = arith.constant 0 : index
    %c0_41 = arith.constant 0 : index
    %c0_42 = arith.constant 0 : index
    %96 = vector.load %arg7[%c0_40, %c0_41, %c0_42] : memref<1x64x32xbf16, #tpu.memory_space<vmem>>, vector<1x64x32xbf16>
    %97 = vector.shape_cast %96 : vector<1x64x32xbf16> to vector<64x32xbf16>
    %cst_43 = arith.constant dense<0.000000e+00> : vector<8x32xf32>
    %98 = tpu.matmul %95, %97, %cst_43 {dimension_numbers = #tpu.dot_dimension_numbers<[1], [0], [0], [1], [0, 0, 1, 1], [], []>} : vector<8x64xbf16>, vector<64x32xbf16>, vector<8x32xf32> -> vector<8x32xf32>
    %c0_44 = arith.constant 0 : index
    %c5 = arith.constant 5 : index
    %c0_45 = arith.constant 0 : index
    %99 = vector.load %arg8[%c0_44, %c5, %c0_45] : memref<1x8x96xf32, #tpu.memory_space<vmem>>, vector<1x1x32xf32>
    %100 = vector.shape_cast %99 : vector<1x1x32xf32> to vector<1x32xf32>
    %101 = vector.broadcast %100 : vector<1x32xf32> to vector<8x32xf32>
    %102 = arith.addf %98, %101 : vector<8x32xf32>
    %103 = arith.addf %102, %78 : vector<8x32xf32>
    %c0_46 = arith.constant 0 : index
    %c6 = arith.constant 6 : index
    %c0_47 = arith.constant 0 : index
    %104 = vector.load %arg8[%c0_46, %c6, %c0_47] : memref<1x8x96xf32, #tpu.memory_space<vmem>>, vector<1x1x32xf32>
    %105 = vector.shape_cast %104 : vector<1x1x32xf32> to vector<1x32xf32>
    %c0_48 = arith.constant 0 : index
    %c7 = arith.constant 7 : index
    %c0_49 = arith.constant 0 : index
    %106 = vector.load %arg8[%c0_48, %c7, %c0_49] : memref<1x8x96xf32, #tpu.memory_space<vmem>>, vector<1x1x32xf32>
    %107 = vector.shape_cast %106 : vector<1x1x32xf32> to vector<1x32xf32>
    %cst_50 = arith.constant dense<0.000000e+00> : vector<8xf32>
    %108 = vector.multi_reduction <add>, %103, %cst_50 [1] : vector<8x32xf32> to vector<8xf32>
    %109 = vector.shape_cast %108 : vector<8xf32> to vector<8x1xf32>
    %cst_51 = arith.constant 3.200000e+01 : f32
    %110 = vector.broadcast %cst_51 : f32 to vector<8x1xf32>
    %111 = arith.divf %109, %110 : vector<8x1xf32>
    %112 = vector.broadcast %111 : vector<8x1xf32> to vector<8x32xf32>
    %113 = arith.subf %103, %112 : vector<8x32xf32>
    %114 = arith.mulf %113, %113 : vector<8x32xf32>
    %cst_52 = arith.constant dense<0.000000e+00> : vector<8xf32>
    %115 = vector.multi_reduction <add>, %114, %cst_52 [1] : vector<8x32xf32> to vector<8xf32>
    %116 = vector.shape_cast %115 : vector<8xf32> to vector<8x1xf32>
    %cst_53 = arith.constant 3.200000e+01 : f32
    %117 = vector.broadcast %cst_53 : f32 to vector<8x1xf32>
    %118 = arith.divf %116, %117 : vector<8x1xf32>
    %cst_54 = arith.constant 9.99999974E-6 : f32
    %119 = vector.broadcast %cst_54 : f32 to vector<8x1xf32>
    %120 = arith.addf %118, %119 : vector<8x1xf32>
    %121 = math.rsqrt %120 : vector<8x1xf32>
    %122 = vector.broadcast %121 : vector<8x1xf32> to vector<8x32xf32>
    %123 = arith.mulf %113, %122 : vector<8x32xf32>
    %124 = vector.broadcast %105 : vector<1x32xf32> to vector<8x32xf32>
    %125 = arith.mulf %123, %124 : vector<8x32xf32>
    %126 = vector.broadcast %107 : vector<1x32xf32> to vector<8x32xf32>
    %127 = arith.addf %125, %126 : vector<8x32xf32>
    %c0_55 = arith.constant 0 : index
    %c0_56 = arith.constant 0 : index
    %128 = vector.load %arg12[%c0_55, %c0_56] : memref<8x32xf32, #tpu.memory_space<vmem>>, vector<8x32xf32>
    tpu.vector_store %arg12[%c0_55, %c0_56], %127 {strides = array<i32>} : memref<8x32xf32, #tpu.memory_space<vmem>>, vector<8x32xf32>,
    %c1_i32 = arith.constant 1 : i32
    %129 = arith.cmpi eq, %arg1, %c1_i32 : i32
    %130 = arith.extui %129 : i1 to i32
    %c0_i32_57 = arith.constant 0 : i32
    %131 = arith.cmpi ne, %130, %c0_i32_57 : i32
    scf.if %131 {
      %132 = vector.extract_strided_slice %127 {offsets = [0, 0], sizes = [1, 32], strides = [1, 1]} : vector<8x32xf32> to vector<1x32xf32>
      %133 = arith.truncf %132 : vector<1x32xf32> to vector<1x32xbf16>
      %c0_58 = arith.constant 0 : index
      %c128 = arith.constant 128 : index
      %134 = vector.load %arg9[%c0_58, %c128] : memref<32x160xbf16, #tpu.memory_space<vmem>>, vector<32x32xbf16>
      %cst_59 = arith.constant dense<0.000000e+00> : vector<1x32xf32>
      %135 = tpu.matmul %133, %134, %cst_59 {dimension_numbers = #tpu.dot_dimension_numbers<[1], [0], [0], [1], [0, 0, 1, 1], [], []>} : vector<1x32xbf16>, vector<32x32xbf16>, vector<1x32xf32> -> vector<1x32xf32>
      %c2_60 = arith.constant 2 : index
      %c0_61 = arith.constant 0 : index
      %136 = vector.load %arg10[%c2_60, %c0_61] : memref<8x128xf32, #tpu.memory_space<vmem>>, vector<1x32xf32>
      %137 = arith.addf %135, %136 : vector<1x32xf32>
      %138 = math.tanh %137 : vector<1x32xf32>
      %139 = arith.truncf %138 : vector<1x32xf32> to vector<1x32xbf16>
      %c0_62 = arith.constant 0 : index
      %c0_63 = arith.constant 0 : index
      %140 = vector.load %arg9[%c0_62, %c0_63] : memref<32x160xbf16, #tpu.memory_space<vmem>>, vector<32x128xbf16>
      %cst_64 = arith.constant dense<0.000000e+00> : vector<1x128xf32>
      %141 = tpu.matmul %139, %140, %cst_64 {dimension_numbers = #tpu.dot_dimension_numbers<[1], [0], [0], [1], [0, 0, 1, 1], [], []>} : vector<1x32xbf16>, vector<32x128xbf16>, vector<1x128xf32> -> vector<1x128xf32>
      %c3_65 = arith.constant 3 : index
      %c0_66 = arith.constant 0 : index
      %142 = vector.load %arg10[%c3_65, %c0_66] : memref<8x128xf32, #tpu.memory_space<vmem>>, vector<1x128xf32>
      %143 = arith.addf %141, %142 : vector<1x128xf32>
      %cst_67 = arith.constant 0.000000e+00 : f32
      %144 = vector.broadcast %cst_67 : f32 to vector<1x128xf32>
      %145 = arith.maximumf %143, %144 : vector<1x128xf32>
      %c4_68 = arith.constant 4 : index
      %c0_69 = arith.constant 0 : index
      %146 = vector.load %arg10[%c4_68, %c0_69] : memref<8x128xf32, #tpu.memory_space<vmem>>, vector<1x128xf32>
      %147 = arith.mulf %145, %146 : vector<1x128xf32>
      %cst_70 = arith.constant dense<0.000000e+00> : vector<1xf32>
      %148 = vector.multi_reduction <add>, %147, %cst_70 [1] : vector<1x128xf32> to vector<1xf32>
      %149 = vector.shape_cast %148 : vector<1xf32> to vector<1x1xf32>
      %c5_71 = arith.constant 5 : index
      %c0_72 = arith.constant 0 : index
      %150 = vector.load %arg10[%c5_71, %c0_72] : memref<8x128xf32, #tpu.memory_space<vmem>>, vector<1x1xf32>
      %151 = arith.addf %149, %150 : vector<1x1xf32>
      %152 = arith.negf %151 : vector<1x1xf32>
      %153 = math.exp %152 : vector<1x1xf32>
      %cst_73 = arith.constant 1.000000e+00 : f32
      %154 = vector.broadcast %cst_73 : f32 to vector<1x1xf32>
      %155 = arith.addf %154, %153 : vector<1x1xf32>
      %156 = arith.divf %154, %155 : vector<1x1xf32>
      %157 = vector.shape_cast %156 : vector<1x1xf32> to vector<1x1xf32>
      %158 = vector.broadcast %157 : vector<1x1xf32> to vector<1x128xf32>
      %c0_74 = arith.constant 0 : index
      %c0_75 = arith.constant 0 : index
      %c0_76 = arith.constant 0 : index
      %159 = vector.load %arg11[%c0_74, %c0_75, %c0_76] : memref<1x1x128xf32, #tpu.memory_space<vmem>>, vector<1x1x128xf32>
      %160 = vector.shape_cast %159 : vector<1x1x128xf32> to vector<1x128xf32>
      %161 = vector.shape_cast %158 : vector<1x128xf32> to vector<1x1x128xf32>
      tpu.vector_store %arg11[%c0_74, %c0_75, %c0_76], %161 {strides = array<i32>} : memref<1x1x128xf32, #tpu.memory_space<vmem>>, vector<1x1x128xf32>,
    } else {
    }
    return
  }
  func.func @transform_0(%arg0: i32, %arg1: i32) -> (i32, i32, i32) {
    %c0_i32 = arith.constant 0 : i32
    %c0_i32_0 = arith.constant 0 : i32
    %c0_i32_1 = arith.constant 0 : i32
    return %arg0, %c0_i32, %c0_i32_0 : i32, i32, i32
  }
  func.func @transform_1(%arg0: i32, %arg1: i32) -> (i32, i32, i32) {
    %c0_i32 = arith.constant 0 : i32
    %c0_i32_0 = arith.constant 0 : i32
    %c0_i32_1 = arith.constant 0 : i32
    return %arg0, %c0_i32, %c0_i32_0 : i32, i32, i32
  }
  func.func @transform_2(%arg0: i32, %arg1: i32) -> (i32, i32, i32) {
    %c0_i32 = arith.constant 0 : i32
    %c0_i32_0 = arith.constant 0 : i32
    %c0_i32_1 = arith.constant 0 : i32
    return %arg1, %c0_i32, %c0_i32_0 : i32, i32, i32
  }
  func.func @transform_3(%arg0: i32, %arg1: i32) -> (i32, i32, i32) {
    %c0_i32 = arith.constant 0 : i32
    %c0_i32_0 = arith.constant 0 : i32
    %c0_i32_1 = arith.constant 0 : i32
    return %arg1, %c0_i32, %c0_i32_0 : i32, i32, i32
  }
  func.func @transform_4(%arg0: i32, %arg1: i32) -> (i32, i32, i32) {
    %c0_i32 = arith.constant 0 : i32
    %c0_i32_0 = arith.constant 0 : i32
    %c0_i32_1 = arith.constant 0 : i32
    return %arg1, %c0_i32, %c0_i32_0 : i32, i32, i32
  }
  func.func @transform_5(%arg0: i32, %arg1: i32) -> (i32, i32, i32) {
    %c0_i32 = arith.constant 0 : i32
    %c0_i32_0 = arith.constant 0 : i32
    %c0_i32_1 = arith.constant 0 : i32
    return %arg1, %c0_i32, %c0_i32_0 : i32, i32, i32
  }
  func.func @transform_6(%arg0: i32, %arg1: i32) -> (i32, i32, i32) {
    %c0_i32 = arith.constant 0 : i32
    %c0_i32_0 = arith.constant 0 : i32
    %c0_i32_1 = arith.constant 0 : i32
    return %arg1, %c0_i32, %c0_i32_0 : i32, i32, i32
  }
  func.func @transform_7(%arg0: i32, %arg1: i32) -> (i32, i32) {
    %c0_i32 = arith.constant 0 : i32
    %c0_i32_0 = arith.constant 0 : i32
    %c0_i32_1 = arith.constant 0 : i32
    return %c0_i32, %c0_i32_0 : i32, i32
  }
  func.func @transform_8(%arg0: i32, %arg1: i32) -> (i32, i32) {
    %c0_i32 = arith.constant 0 : i32
    %c0_i32_0 = arith.constant 0 : i32
    %c0_i32_1 = arith.constant 0 : i32
    return %c0_i32, %c0_i32_0 : i32, i32
  }
  func.func @transform_9(%arg0: i32, %arg1: i32) -> (i32, i32, i32) {
    %c0_i32 = arith.constant 0 : i32
    %c0_i32_0 = arith.constant 0 : i32
    %c0_i32_1 = arith.constant 0 : i32
    return %arg0, %c0_i32, %c0_i32_0 : i32, i32, i32
  }
}

</mosaic_0001>

<bundles_post_ra>
// kernel: tpu_custom_call.1
= control target key start
LH: loop header
LB: loop body
LE: loop exit
PB: predicated region body
PF: predicated region fallthrough
CT: control target
= control target key end

     0   :  { %s3102_s0 = inlined_call_operand.hbm [shape: f32[2,8,32], index: 0, kind: input, shape index: {}]   ;;  %s3103_s1 = inlined_call_operand.hbm [shape: f32[2,1,8], index: 1, kind: input, shape index: {}]   ;;  %s3104_s2 = inlined_call_operand.vmem [shape: bf16[2,32,96], index: 2, kind: input, shape index: {}]   ;;  %s3105_s3 = inlined_call_operand.vmem [shape: bf16[2,32,32], index: 3, kind: input, shape index: {}]   ;;  %s3106_s4 = inlined_call_operand.vmem [shape: bf16[2,32,64], index: 4, kind: input, shape index: {}]   ;;  %s3107_s5 = inlined_call_operand.vmem [shape: bf16[2,64,32], index: 5, kind: input, shape index: {}]   ;;  %s3108_s6 = inlined_call_operand.hbm [shape: f32[2,8,96], index: 6, kind: input, shape index: {}]   ;;  %s3109_s7 = inlined_call_operand.hbm [shape: bf16[32,160], index: 7, kind: input, shape index: {}]   ;;  %s3110_s8 = inlined_call_operand.vmem [shape: f32[8,128], index: 8, kind: input, shape index: {}]   ;;  %s3111_s9 = inlined_call_operand.hbm [shape: f32[2,1,128], index: 9, kind: output, shape index: {}]  }
   0x1   :  { %3127 = sst [smem:[#allocation24_spill]] %s3102_s0 }
   0x2   :  { %3128 = sst [smem:[#allocation25_spill]] %s3103_s1 }
   0x3   :  { %3129 = sst [smem:[#allocation26_spill]] %s3105_s3 }
   0x4   :  { %3130 = sst [smem:[#allocation27_spill]] %s3106_s4 }
   0x5   :  { %3131 = sst [smem:[#allocation28_spill]] %s3107_s5 }
   0x6   :  { %3132 = sst [smem:[#allocation29_spill]] %s3108_s6 }
   0x7   :  { %3133 = sst [smem:[#allocation30_spill]] %s3109_s7 }
   0x8   :  { %3134 = sst [smem:[#allocation31_spill]] %s3110_s8 }
   0x9   :  { %3135 = sst [smem:[#allocation32_spill]] %s3111_s9 }
   0xa   :  { %14 = vsyncpa [#allocation4], 0 }
   0xb   :  { %16 = vsyncpa [#allocation4 + $0x1], 0 }
   0xc   :  { %17 = vsyncpa [#allocation7], 0 }
   0xd   :  { %19 = vsyncpa [#allocation7 + $0x1], 0 }
   0xe   :  { %20 = vsyncpa [#allocation10], 0 }
   0xf   :  { %21 = vsyncpa [#allocation5], 0 }
  0x10   :  { %23 = vsyncpa [#allocation5 + $0x1], 0  ;;  %s2607_s30 = smov 0   ;;  %s2609_s10 = smov 0  }
  0x11   :  { %s2611_s11 = smov 0   ;;  %s2613_s12 = smov 0  }
  0x12   :  { %s2615_s13 = smov 0   ;;  %s2617_s14 = smov 0  }
  0x13   :  { %s2619_s15 = smov 0   ;;  %s2621_s16 = smov 0  }
  0x14   :  { %s2623_s17 = smov 0   ;;  %s2625_s18 = smov 0  }
  0x15   :  { %s2627_s19 = smov 0  }
  0x16 LB: > { %3136 = sst [smem:[#allocation17_spill]] %s2509_s12  ;;  %s2663_s20 = sadd.s32 4294967295, %s2537_s19   ;;  %s2537_s19 = sphi %s2627_s19, %s29_s19   ;;  %s2533_s18 = sphi %s2625_s18, %s3179_s18   ;;  %s2529_s17 = sphi %s2623_s17, %s3187_s17   ;;  %s2525_s16 = sphi %s2621_s16, %s3177_s16   ;;  %s2521_s15 = sphi %s2619_s15, %s3186_s15   ;;  %s2517_s14 = sphi %s2617_s14, %s3185_s14   ;;  %s2513_s13 = sphi %s2615_s13, %s3184_s13   ;;  %s2509_s12 = sphi %s2613_s12, %s3183_s12   ;;  %s2505_s11 = sphi %s2611_s11, %s3182_s11   ;;  %s2501_s10 = sphi %s2609_s10, %s3181_s10   ;;  %s2497_s30 = sphi %s2607_s30, %s3180_s30  }
  0x17   : > { %3137 = sst [smem:[#allocation18_spill]] %s2525_s16  ;;  %s1944_s21 = sadd.s32 4294967294, %s2537_s19  }
  0x18   : > { %3138 = sst [smem:[#allocation19_spill]] %s2533_s18  ;;  %p55_p0 = scmp.ne.s32.totalorder %s2517_s14, %s2513_s13 }
  0x19   : > { %p3119_p1 = scmp.eq.s32.totalorder %s2537_s19, 0  ;;  %p61_p2 = scmp.ne.s32.totalorder %s2513_s13, %s2509_s12 }
  0x1a   : > { %p283_p3 = scmp.eq.s32.totalorder %s2663_s20, 3  ;;  %p289_p5 = scmp.eq.s32.totalorder %s1944_s21, 3 }
  0x1b   : > { %p57_p4 = por %p3119_p1, %p55_p0  ;;  %p3118_p8 = scmp.lt.s32.totalorder %s2537_s19, 4 }
  0x1c   : > { %p2676_p6 = por %p283_p3, %p55_p0  ;;  %p2683_p7 = por %p289_p5, %p61_p2 }
  0x1d   : > { %s2689_s26 = sand.u32 1, %s2517_s14   ;;  %s343_s27 = sand.u32 1, %s2537_s19  }
  0x1e   : > { %s3139_s24 = scalar_select %p2676_p6, 1, 0 }
  0x1f   : > { %s3141_s25 = scalar_select %p2683_p7, 1, 0 }
  0x20   : > { %3140 = sst [smem:[#allocation20_spill]] %s3139_s24  ;;  %p2694_p9 = pnand %p3118_p8, %p57_p4 }
  0x21   : > { %3142 = sst [smem:[#allocation21_spill]] %s3141_s25  ;;  %s1950_s29 = sshll.u32 %s2533_s18, 4 }
  0x22   : > { %s346_s21 = scalar_lea.vmem [#allocation6], %s2689_s26  ;;  %s3144_s1 = sld [smem:[#allocation25_spill]] }
  0x23   : > { %s353_s23 = sshll.u32 %s346_s21, 4  ;;  %s2703_s25 = scalar_lea.sflag [#allocation7], %s343_s27  ;;  %s354_s23 = int_to_ptr.vmem [resolvable:$true] %s353_s23 }
  0x24   : > { %p3121_p10 = pneg %p2694_p9  ;;  %s2308_s16 = scalar_lea.vmem %s354_s23, 16 }
  0x25   : > { %p2309_p11 = scmp.ne.s32.totalorder %s354_s23, %s2308_s16  ;;  %s2539_s8 = smov [#allocation6]  }
  0x26   : > { %s2313_s5 = sshll.u32 %s2539_s8, 4  ;;  %s2314_s5 = int_to_ptr.vmem [resolvable:$false] %s2313_s5 }
  0x27   : > { %p2311_p12 = pnand %p2309_p11, %p3121_p10  ;;  %s2315_s4 = scalar_lea.vmem %s2314_s5, 32 }
  0x28   : > { %s351_s24 = scalar_lea.hbm %s3144_s1, %s1950_s29  ;;  %p2316_p0 = scmp.lt.s32.totalorder %s354_s23, %s2314_s5 }
  0x29   : > { %p2312_p13 = pneg %p2311_p12  ;;  %p2317_p3 = scmp.lt.s32.totalorder %s2315_s4, %s2308_s16 }
  0x2b   : > { %p2318_p4 = por %p2317_p3, %p2316_p0 }
  0x2d   : > { %p2319_p5 = pnand %p2318_p4, %p2312_p13 }
  0x2f   : > { %2322 = shalt.err (!%p2319_p5)
}
  0x30   : > { %2144 = dma.hbm_to_vmem [thread:$0]  (!%p2694_p9), %s351_s24, 16, %s354_s23, %s2703_s25  }
  0x31   : > { %p3120_p11 = scmp.eq.s32.totalorder %s2663_s20, 0  ;;  %p1945_p12 = scmp.ge.s32.totalorder %s2537_s19, 1 }
  0x32   : > { %p296_p8 = scmp.lt.s32.totalorder %s2537_s19, 5  ;;  %s2540_s8 = smov [#allocation9]  }
  0x33   : > { %p2721_p13 = por %p3120_p11, %p61_p2  ;;  %s308_s9 = sshll.u32 %s2540_s8, 4  ;;  %s309_s9 = int_to_ptr.vmem [resolvable:$true] %s308_s9 }
  0x34   : > { %p2725_p0 = pnand %p1945_p12, %p296_p8  ;;  %s1948_s16 = sshll.u32 %s2689_s26, 3 }
  0x35   : > { %s1949_s23 = sshll.u32 %s2533_s18, 7  ;;  %s329_s24 = scalar_lea.vmem [#allocation3], %s1948_s16 }
  0x36   : > { %p2134_p3 = pneg %p2725_p0  ;;  %s336_s27 = sshll.u32 %s329_s24, 4  ;;  %s337_s27 = int_to_ptr.vmem [resolvable:$true] %s336_s27 }
  0x37   : > { %s3148_s0 = sld [smem:[#allocation24_spill]]  ;;  %s2334_s8 = scalar_lea.vmem %s309_s9, 512 }
  0x38   : > { %p2734_p4 = pnand %p2134_p3, %p3120_p11  ;;  %p2335_p8 = scmp.ne.s32.totalorder %s309_s9, %s2334_s8 }
  0x39   : > { %p2342_p1 = scmp.lt.s32.totalorder %s309_s9, %s309_s9  ;;  %p2343_p3 = scmp.lt.s32.totalorder %s2334_s8, %s2334_s8 }
  0x3a   : > { %p2325_p2 = pneg %p2734_p4 }
  0x3b   : > { %p2344_p11 = por %p2343_p3, %p2342_p1 }
  0x3c   : > { %p2337_p5 = pnand %p2335_p8, %p2325_p2 }
  0x3d   : > { %s2742_s1 = scalar_lea.hbm %s3148_s0, %s1949_s23 }
  0x3e   : > { %p2338_p12 = pneg %p2337_p5 }
  0x40   : > { %p2345_p10 = pnand %p2344_p11, %p2338_p12 }
  0x42   : > { %2348 = shalt.err (!%p2345_p10)
}
  0x43   : > { %s2541_s12 = smov 128   ;;  %s2542_s16 = smov 8  }
  0x44   : > { %s3149_s7 = sld [smem:[#allocation30_spill]]  ;;  %s326_s29 = scalar_lea.sflag [#allocation4], %s2689_s26 }
  0x45   : > { %s2362_s21 = scalar_lea.vmem %s337_s27, 128  ;;  %p3150_p8 = pneg %p2694_p9 }
  0x46   : > { %p2363_p2 = scmp.ne.s32.totalorder %s337_s27, %s2362_s21  ;;  %s2543_s8 = smov [#allocation3]  }
  0x47   : > { %s2367_s0 = sshll.u32 %s2543_s8, 4  ;;  %s2368_s0 = int_to_ptr.vmem [resolvable:$false] %s2367_s0 }
  0x48   : > { %p2365_p5 = pnand %p2363_p2, %p3150_p8  ;;  %s2369_s3 = scalar_lea.vmem %s2368_s0, 256 }
  0x49   : > { %p2370_p10 = scmp.lt.s32.totalorder %s337_s27, %s2368_s0  ;;  %p2371_p11 = scmp.lt.s32.totalorder %s2369_s3, %s2362_s21 }
  0x4a   : > { %2137 = dma.hbm_to_vmem [thread:$0]  (!%p2734_p4), %s3149_s7, 512, %s309_s9, [#allocation10], %s2541_s12, %s2541_s12, %s2542_s16  }
  0x4b   : > { %p2366_p1 = pneg %p2365_p5  ;;  %p2372_p12 = por %p2371_p11, %p2370_p10 }
  0x4d   : > { %p2373_p3 = pnand %p2372_p12, %p2366_p1 }
  0x4f   : > { %2376 = shalt.err (!%p2373_p3)
}
  0x50   : > { %2141 = dma.hbm_to_vmem [thread:$0]  (!%p2694_p9), %s2742_s1, 128, %s337_s27, %s326_s29  }
  0x51   : > { %s38_s0 = sadd.s32 1, %s2529_s17  ;;  %s204_s3 = sadd.s32 1, %s2505_s11 }
  0x52   : > { %p39_p4 = scmp.ge.s32.totalorder %s38_s0, 2  ;;  %p211_p2 = scmp.ne.s32.totalorder %s2505_s11, %s2501_s10 }
  0x53   : > { %p217_p8 = scmp.ne.s32.totalorder %s2501_s10, %s2497_s30  ;;  %s3152_s12 = sadd.s32 1, %s2533_s18 }
  0x54   : > { %s3189_s0 = smov (%p39_p4, %s38_s0), 0  ;;  %s3191_s12 = smov (!%p39_p4, %s3152_s12), %s2533_s18 }
  0x55   : > { %3151 = sst [smem:[#allocation22_spill]] %s3189_s0  ;;  %s201_s26 = ssub.s32 %s2529_s17, %s3189_s0 }
  0x56   : > { %p3153_p5 = scmp.eq.s32.totalorder %s2537_s19, 0  ;;  %p43_p9 = scmp.ge.s32.totalorder %s3191_s12, 2 }
  0x57   : > { %p202_p10 = scmp.eq.s32.totalorder %s201_s26, 0  ;;  %p3155_p11 = scmp.eq.s32.totalorder %s2663_s20, 0 }
  0x58   : > { %p2773_p1 = por %p211_p2, %p3153_p5  ;;  %s394_s30 = sand.u32 1, %s2505_s11  }
  0x59   : > { %p2779_p12 = por %p217_p8, %p3155_p11  ;;  %s3193_s12 = smov (%p43_p9, %s3191_s12), 0 }
  0x5a   : > { %3157 = sst [smem:[#allocation23_spill]] %s3193_s12  ;;  %s45_s22 = ssub.s32 %s2533_s18, %s3193_s12 }
  0x5b   : > { %s2787_s9 = scalar_select %p202_p10, %s2505_s11, %s204_s3  }
  0x5c   : > { %s1951_s27 = sshll.u32 %s394_s30, 3  ;;  %p46_p3 = scmp.eq.s32.totalorder %s45_s22, 0 }
  0x5d   : > { %s1952_s16 = sshll.u32 %s2529_s17, 7  ;;  %s396_s24 = scalar_lea.vmem [#allocation8], %s1951_s27 }
  0x5e   : > { %s403_s23 = sshll.u32 %s396_s24, 4  ;;  %s3158_s29 = sadd.s32 1, %s2517_s14  ;;  %s404_s23 = int_to_ptr.vmem [resolvable:$true] %s403_s23 }
  0x5f   : > { %s2795_s21 = scalar_select %p46_p3, %s2517_s14, %s3158_s29  }
  0x60   : > { %s3159_s6 = sld [smem:[#allocation29_spill]]  ;;  %p3160_p4 = scmp.lt.s32.totalorder %s2537_s19, 4 }
  0x61   : > { %s2390_s3 = scalar_lea.vmem %s404_s23, 128  ;;  %s2544_s30 = smov [#allocation8]  }
  0x62   : > { %p2804_p2 = pnand %p3160_p4, %p2773_p1  ;;  %p2391_p5 = scmp.ne.s32.totalorder %s404_s23, %s2390_s3 }
  0x63   : > { %s2395_s22 = sshll.u32 %s2544_s30, 4  ;;  %s2396_s22 = int_to_ptr.vmem [resolvable:$false] %s2395_s22 }
  0x64   : > { %p2379_p8 = pneg %p2804_p2  ;;  %s2397_s27 = scalar_lea.vmem %s2396_s22, 256 }
  0x65   : > { %p2398_p11 = scmp.lt.s32.totalorder %s404_s23, %s2396_s22  ;;  %p2399_p3 = scmp.lt.s32.totalorder %s2397_s27, %s2390_s3 }
  0x66   : > { %s401_s7 = scalar_lea.hbm %s3159_s6, %s1952_s16  ;;  %p2393_p9 = pnand %p2391_p5, %p2379_p8 }
  0x67   : > { %p2400_p7 = por %p2399_p3, %p2398_p11 }
  0x68   : > { %p2394_p10 = pneg %p2393_p9 }
  0x6a   : > { %p2401_p6 = pnand %p2400_p7, %p2394_p10 }
  0x6c   : > { %2404 = shalt.err (!%p2401_p6)
}
  0x6d   : > { %2147 = dma.hbm_to_vmem [thread:$0]  (!%p2804_p2), %s401_s7, 128, %s404_s23, %s2703_s25  }
  0x6e   : > { %412 = sbr.rel (%p2725_p0) target bundleno = 3735 (0xe97), region = 56  ;;  %s2816_s28 = sand.u32 (!%p2725_p0), 1, %s2513_s13  }
  0x6f   : > { %s1954_s16 = sshll.u32 (!%p2725_p0), %s2816_s28, 3  ;;  %s415_s24 = scalar_lea.sflag (!%p2725_p0), [#allocation4], %s2816_s28 }
  0x70   : > { %s418_s29 = scalar_lea.vmem (!%p2725_p0), [#allocation3], %s1954_s16 }
  0x73   : > { %2476 = dma.done.wait (%p2721_p13), %s415_s24, 128  }
  0x74   : > { %2478 = vsyncadd (%p2721_p13), %s415_s24, 4294967168  ;;  %s423_s7 = sand.u32 1, %s2663_s20  }
  0x75   : > { %s424_s25 = scalar_lea.sflag [#allocation7], %s423_s7 }
  0x76   : > { %2480 = dma.done.wait (%p2721_p13), %s424_s25, 16  }
  0x77   : > { %2482 = vsyncadd (%p2721_p13), %s424_s25, 4294967280  ;;  %s433_s0 = sand.u32 1, %s2501_s10  }
  0x78   : > { %s1955_s23 = sshll.u32 %s433_s0, 3 }
  0x79   : > { %s2831_s8 = scalar_lea.vmem [#allocation8], %s1955_s23 }
  0x7a   : > { %2484 = dma.done.wait (%p2779_p12), %s424_s25, 128  }
  0x7b   : > { %2486 = vsyncadd (%p2779_p12), %s424_s25, 4294967168  ;;  %p3162_p6 = scmp.eq.s32.totalorder %s2663_s20, 0 }
  0x7d   : > { %2488 = dma.done.wait (%p3162_p6), [#allocation10], 512   ;;  %p3163_p7 = pmov %p3162_p6 }
  0x7e   : > { %p502_p13 = scmp.lt.s32.totalorder %s2521_s15, 1  ;;  %s3164_s24 = sld [smem:[#allocation26_spill]] }
  0x7f   : > { %2490 = vsyncadd (%p3163_p7), [#allocation10], 4294966784  ;;  %s3165_s0 = sld [smem:[#allocation27_spill]]  ;;  %p1965_p0 = scmp.ne.s32.totalorder %s2521_s15, 0 }
  0x80   : > { %s503_s4 = scalar_select %p502_p13, %s2521_s15, 1 }
  0x81   : > { %s3166_s12 = sld [smem:[#allocation28_spill]] }
  0x82   : > { %s2014_s26 = sshll.u32 %s503_s4, 4  ;;  %s2017_s3 = sshll.u32 %s503_s4, 5 }
  0x83   : > { %s2846_s27 = scalar_lea.vmem %s3104_s2, %s2014_s26  ;;  %s501_s4 = scalar_lea.vmem [#allocation11], %s2816_s28 }
  0x84   : > { %s2851_s7 = scalar_lea.vmem %s3164_s24, %s2014_s26  ;;  %526 = sbr.rel (%p1965_p0) target bundleno = 447 (0x1bf), region = 76 }
  0x85   : > { %s2856_s23 = scalar_lea.vmem %s3165_s0, %s2014_s26  ;;  %s3167_s5 = sld [smem:[#allocation31_spill]] (!%p1965_p0) }
  0x87   : > { %s2861_s18 = scalar_lea.vmem %s3166_s12, %s2017_s3 }
  0x89   : > { %v527_v0 = vld [vmem:[%s418_s29] sm:$0xff]  ;;  %vm530_vm0 = vcmask 261120  }
  0x8a   : > { %v531_v1 = vsel %vm530_vm0, %v527_v0, 0.0 }
  0x8b   : > { %532 = vadd.xlane.f32.xlu0 %v531_v1  ;;  %v1966_v11 = vld [vmem:[%s3167_s5] ss:$0 sm:$0xff]  ;;  %v1967_v13 = vld [vmem:[%s3167_s5 + $0x1] ss:$0 sm:$0xff] }
 0x114   : > { %v533_v2 = vpop.xlane.xlu0 %532 }
 0x115   : > { %v535_v3 = vmul.f32 0.03125, %v533_v2 }
 0x117   : > { %v536_v4 = vsub.f32 %v527_v0, %v535_v3 }
 0x119   : > { %v537_v5 = vmul.f32 %v536_v4, %v536_v4 }
 0x11b   : > { %v538_v6 = vsel %vm530_vm0, %v537_v5, 0.0 }
 0x11c   : > { %539 = vadd.xlane.f32.xlu0 %v538_v6 }
 0x1a5   : > { %v540_v7 = vpop.xlane.xlu0 %539 }
 0x1a6   : > { %v541_v8 = vmul.f32 0.03125, %v540_v7 }
 0x1a8   : > { %v542_v9 = vadd.f32 1e-05, %v541_v8 }
 0x1aa   : > { %2258 = vrsqrt.f32 %v542_v9 }
 0x1b7   : > { %v2259_v10 = vpop.eup %2258 }
 0x1b8   : > { %v544_v12 = vmul.f32 %v2259_v10, %v536_v4 }
 0x1ba   : > { %v549_v14 = vmul.f32 %v1966_v11, %v544_v12 }
 0x1bc   : > { %v554_v15 = vadd.f32 %v1967_v13, %v549_v14 }
 0x1be   : > { %555 = vst.msk [vmem:[#allocation2] sm:$0xff] %vm530_vm0, %v554_v15 }
 0x1bf PF: > { %v2260_v16 = vld [vmem:[%s2846_s27 + $0x8] sm:$0xff]   ;;  %v2545_v17 = vmov 0.0   ;;  %v2261_v18 = vld [vmem:[%s2846_s27] sm:$0xff]   ;;  %vm2546_vm1 = vmmov 0   ;;  %vm580_vm2 = vcmask 261120   ;;  %s2547_s3 = smov 112   ;;  %v632_v30 = vlaneseq }
 0x1c0   : > { %2046 = vmatprep.subr.bf16.mxu0 %v2545_v17  ;;  %2054 = vmatprep.subr.bf16.mxu1 %v2545_v17  ;;  %v1968_v21 = vld [vmem:[%s2831_s8] ss:$0 sm:$0xff]  ;;  %s2548_s30 = smov 96   ;;  %v2549_v28 = vmov 1983009808   ;;  %vm992_vm3 = vcmask 130048  }
 0x1c1   : > { %2047 = vmatpush3.bf16.msra.mxu0 %v2260_v16  ;;  %2050 = vmatprep.mubr.msk.bf16.mxu0 %vm2546_vm1, %v2545_v17  ;;  %v630_v29 = vunpack.c.l.s4 %v2549_v28  ;;  %v633_v32 = vshrl.u32 %v632_v30, 7  ;;  %v2550_v36 = vmov 1934713408   ;;  %s3168_s22 = scalar_lea.vmem [#allocation6], %s2816_s28  ;;  %vm1095_vm4 = vcmask 64512   ;;  %s2551_s27 = smov 64  }
 0x1c2   : > { %2048 = vmatprep.subr.bf16.mxu0 %v2545_v17  ;;  %2056 = vmatprep.mubr.msk.bf16.mxu1 %vm2546_vm1, %v2545_v17  ;;  %v661_v37 = vunpack.c.l.s4 %v2550_v36  ;;  %vm1125_vm5 = vcmask 1043456   ;;  %s2552_s1 = smov 16   ;;  %vm1536_vm6 = vcmask 523264   ;;  %p2003_p1 = scmp.ne.s32.totalorder %s2521_s15, 1 }
 0x1c3   : > { %v631_v31 = vunpack.c.0.s8 %v630_v29 }
 0x1c4   : > { %v662_v39 = vunpack.c.0.s8 %v661_v37 }
 0x1c5   : > { %v2880_v19 = vld [vmem:[#allocation2] sm:$0xff]  ;;  %2049 = vmatpush3.bf16.msra.mxu0 %v2261_v18  ;;  %v2903_v35 = vsub.s32 %v631_v31, %v633_v32 }
 0x1c6   : > { %v558_v20 = vpack.c.bf16 %v2880_v19, %v2880_v19  ;;  %2060 = vmatprep.subr.bf16.mxu0 %v2545_v17  ;;  %v2912_v47 = vsub.s32 %v662_v39, %v633_v32 }
 0x1c8   : > { %2051 = vmatmul.mubr.msk.bf16.vlgmr.msra.gmra.mxu0 %vm580_vm2, %v558_v20 }
 0x1c9   : > { %2062 = vmatprep.mubr.msk.bf16.mxu0 %vm2546_vm1, %v2545_v17 }
 0x288   : > { %v618_v22 = vpop.f32.mrf.mxu0 }
 0x289   : > { %v2892_v23 = vadd.f32 %v1968_v21, %v618_v22 }
 0x28a   : > { %v2052_v24 = vpop.f32.mrf.mxu0 }
 0x28b   : > { %625 = vrot.lane.b32.xlu0 %v2892_v23, %s2547_s3  ;;  %v628_v34 = vcombine.high %v2892_v23, %v2545_v17  ;;  %v635_v43 = vrot.slane %v2892_v23, %v2903_v35 }
 0x28c   : > { %v621_v25 = vpop.f32.mrf.mxu0 }
 0x28d   : > { %v642_v40 = vrot.slane %v628_v34, %v2903_v35 }
 0x28e   : > { %v2053_v26 = vpop.f32.mrf.mxu0 }
 0x28f   : > { %744 = vrot.lane.b32.xlu0 %v2892_v23, %s2548_s30 }
 0x2fd   : > { %v2896_v27 = vpop.permute.xlu0 %625 }
 0x2fe   : > { %746 = vrot.lane.b32.xlu1 %v2896_v27, %s2548_s30  ;;  %v643_v33 = vcombine.high %v2896_v27, %v2545_v17  ;;  %v650_v41 = vrot.slane %v2896_v27, %v2903_v35 }
 0x300   : > { %v657_v38 = vrot.slane %v643_v33, %v2903_v35  ;;  %v658_v48 = vcombine.low %v635_v43, %v650_v41  ;;  %v659_v49 = vcombine.high %v635_v43, %v650_v41 }
 0x301   : > { %v745_v42 = vpop.permute.xlu0 %744 }
 0x302   : > { %v674_v44 = vcombine.low %v642_v40, %v657_v38  ;;  %v675_v45 = vcombine.high %v642_v40, %v657_v38  ;;  %v750_v46 = vcombine.high %v745_v42, %v2545_v17  ;;  %v757_v51 = vrot.slane %v745_v42, %v2903_v35 }
 0x303   : > { %v666_v60 = vrot.slane %v658_v48, %v2912_v47  ;;  %v673_v61 = vrot.slane %v659_v49, %v2912_v47 }
 0x304   : > { %v682_v54 = vrot.slane %v674_v44, %v2912_v47  ;;  %v689_v55 = vrot.slane %v675_v45, %v2912_v47  ;;  %v764_v56 = vrot.slane %v750_v46, %v2903_v35  ;;  %v1980_v45 = vld [vmem:[%s3168_s22] ss:$0 sm:$0xff] }
 0x305   : > { %v694_v8 = vcombine.low %v666_v60, %v673_v61  ;;  %v1972_v9 = vcombine.high %v666_v60, %v673_v61 }
 0x306   : > { %v710_v2 = vcombine.low %v682_v54, %v689_v55  ;;  %v1973_v3 = vcombine.high %v682_v54, %v689_v55 }
 0x307   : > { %v701_v21 = vrot.slane %v694_v8, %v2903_v35  ;;  %v709_v22 = vrot.slane %v1972_v9, %v2903_v35 }
 0x308   : > { %v717_v14 = vrot.slane %v710_v2, %v2903_v35  ;;  %v725_v20 = vrot.slane %v1973_v3, %v2903_v35 }
 0x309   : > { %v726_v31 = vcombine.low %v701_v21, %v709_v22 }
 0x30a   : > { %v734_v28 = vcombine.low %v717_v14, %v725_v20 }
 0x30b   : > { %v733_v38 = vrot.slane %v726_v31, %v2912_v47 }
 0x30c   : > { %v741_v34 = vrot.slane %v734_v28, %v2912_v47 }
 0x30e   : > { %v742_v39 = vcombine.low %v733_v38, %v741_v34  ;;  %v743_v40 = vcombine.high %v733_v38, %v741_v34 }
 0x310   : > { %v988_v41 = vpack.c.bf16 %v742_v39, %v742_v39  ;;  %v989_v42 = vpack.c.bf16 %v743_v40, %v743_v40 }
 0x370   : > { %v747_v50 = vpop.permute.xlu1 %746 }
 0x371   : > { %v765_v52 = vcombine.high %v747_v50, %v2545_v17  ;;  %v772_v53 = vrot.slane %v747_v50, %v2903_v35 }
 0x373   : > { %v779_v57 = vrot.slane %v765_v52, %v2903_v35  ;;  %v780_v58 = vcombine.low %v757_v51, %v772_v53  ;;  %v781_v59 = vcombine.high %v757_v51, %v772_v53 }
 0x375   : > { %v788_v62 = vrot.slane %v780_v58, %v2912_v47  ;;  %v795_v63 = vrot.slane %v781_v59, %v2912_v47  ;;  %v796_v0 = vcombine.low %v764_v56, %v779_v57  ;;  %v797_v1 = vcombine.high %v764_v56, %v779_v57 }
 0x377   : > { %v804_v4 = vrot.slane %v796_v0, %v2912_v47  ;;  %v811_v5 = vrot.slane %v797_v1, %v2912_v47  ;;  %v816_v6 = vcombine.low %v788_v62, %v795_v63  ;;  %v1974_v7 = vcombine.high %v788_v62, %v795_v63 }
 0x379   : > { %v832_v10 = vcombine.low %v804_v4, %v811_v5  ;;  %v1975_v11 = vcombine.high %v804_v4, %v811_v5  ;;  %v823_v12 = vrot.slane %v816_v6, %v2903_v35  ;;  %v831_v13 = vrot.slane %v1974_v7, %v2903_v35 }
 0x37b   : > { %v839_v15 = vrot.slane %v832_v10, %v2903_v35  ;;  %v847_v16 = vrot.slane %v1975_v11, %v2903_v35  ;;  %v848_v18 = vcombine.low %v823_v12, %v831_v13 }
 0x37d   : > { %v856_v24 = vcombine.low %v839_v15, %v847_v16  ;;  %v855_v25 = vrot.slane %v848_v18, %v2912_v47 }
 0x37f   : > { %v863_v26 = vrot.slane %v856_v24, %v2912_v47 }
 0x381   : > { %v864_v29 = vcombine.low %v855_v25, %v863_v26  ;;  %v865_v30 = vcombine.high %v855_v25, %v863_v26 }
 0x383   : > { %v990_v32 = vpack.c.bf16 %v864_v29, %v864_v29  ;;  %v991_v33 = vpack.c.bf16 %v865_v30, %v865_v30 }
 0x385   : > { %v997_v36 = vsel %vm992_vm3, %v990_v32, 0  ;;  %v1043_v37 = vsel %vm992_vm3, %v991_v33, 0 }
 0x386   : > { %2055 = vmatpush3.bf16.xpose.msra.mxu1 %v997_v36  ;;  %2061 = vmatpush3.bf16.xpose.msra.mxu0 %v1043_v37 }
 0x387   : > { %2066 = vmatprep.subr.bf16.mxu1 %v2545_v17  ;;  %2072 = vmatprep.subr.bf16.mxu0 %v2545_v17 }
 0x38d   : > { %2057 = vmatmul.mubr.msk.bf16.vlgmr.msra.gmra.mxu1 %vm992_vm3, %v988_v41  ;;  %2063 = vmatmul.mubr.msk.bf16.vlgmr.msra.gmra.mxu0 %vm992_vm3, %v989_v42 }
 0x38e   : > { %2068 = vmatprep.mubr.msk.bf16.mxu1 %vm2546_vm1, %v2545_v17  ;;  %2074 = vmatprep.mubr.msk.bf16.mxu0 %vm2546_vm1, %v2545_v17 }
 0x44d   : > { %v1033_v43 = vpop.f32.mrf.mxu1  ;;  %v1079_v44 = vpop.f32.mrf.mxu0 }
 0x44e   : > { %v1085_v46 = vmul.f32 0.25, %v1033_v43  ;;  %v1086_v48 = vmul.f32 0.25, %v1079_v44 }
 0x44f   : > { %v2058_v49 = vpop.f32.mrf.mxu1  ;;  %v2064_v50 = vpop.f32.mrf.mxu0 }
 0x450   : > { %v1093_v51 = vadd.f32 %v1980_v45, %v1085_v46  ;;  %v1094_v52 = vadd.f32 %v1980_v45, %v1086_v48 }
 0x451   : > { %v1036_v53 = vpop.f32.mrf.mxu1  ;;  %v1082_v54 = vpop.f32.mrf.mxu0 }
 0x452   : > { %v1096_v55 = vsel %vm1095_vm4, %v1093_v51, -inf  ;;  %v1099_v56 = vsel %vm1095_vm4, %v1094_v52, -inf }
 0x453   : > { %1097 = vmax.xlane.f32.xlu1 %v1096_v55  ;;  %v2059_v57 = vpop.f32.mrf.mxu1  ;;  %1100 = vmax.xlane.f32.xlu0 %v1099_v56  ;;  %v2065_v58 = vpop.f32.mrf.mxu0 }
 0x4dc   : > { %v1098_v59 = vpop.xlane.xlu1 %1097  ;;  %v1101_v60 = vpop.xlane.xlu0 %1100 }
 0x4dd   : > { %v1102_v61 = vsub.f32 %v1093_v51, %v1098_v59  ;;  %v1103_v62 = vsub.f32 %v1094_v52, %v1101_v60  ;;  %v2262_v51 = vld [vmem:[%s2851_s7 + $0x8] sm:$0xff]  }
 0x4df   : > { %v1104_v63 = vmul.f32 1.442695, %v1102_v61  ;;  %v1106_v0 = vmul.f32 1.442695, %v1103_v62 }
 0x4e1   : > { %2270 = vpow2.f32 %v1104_v63 }
 0x4e2   : > { %2272 = vpow2.f32 %v1106_v0 }
 0x4ee   : > { %v2271_v1 = vpop.eup %2270 }
 0x4ef   : > { %v2273_v2 = vpop.eup %2272  ;;  %v1108_v3 = vsel %vm1095_vm4, %v2271_v1, 0.0 }
 0x4f0   : > { %1109 = vadd.xlane.f32.xlu0 %v1108_v3  ;;  %v1111_v4 = vsel %vm1095_vm4, %v2273_v2, 0.0 }
 0x4f1   : > { %1112 = vadd.xlane.f32.xlu1 %v1111_v4 }
 0x502   : > { %868 = vrot.lane.b32.xlu1 %v2896_v27, %s2551_s27 }
 0x506   : > { %866 = vrot.lane.b32.xlu0 %v2892_v23, %s2551_s27 }
 0x579   : > { %v1110_v5 = vpop.xlane.xlu0 %1109 }
 0x57a   : > { %v1113_v6 = vpop.xlane.xlu1 %1112  ;;  %2274 = vrcp.f32 %v1110_v5 }
 0x57b   : > { %2276 = vrcp.f32 %v1113_v6 }
 0x57d   : > { %v867_v7 = vpop.permute.xlu0 %866 }
 0x57e   : > { %v869_v8 = vpop.permute.xlu1 %868  ;;  %v872_v9 = vcombine.high %v867_v7, %v2545_v17  ;;  %v879_v10 = vrot.slane %v867_v7, %v2903_v35 }
 0x57f   : > { %v887_v11 = vcombine.high %v869_v8, %v2545_v17  ;;  %v894_v12 = vrot.slane %v869_v8, %v2903_v35 }
 0x580   : > { %v886_v13 = vrot.slane %v872_v9, %v2903_v35 }
 0x581   : > { %v901_v27 = vrot.slane %v887_v11, %v2903_v35  ;;  %v902_v14 = vcombine.low %v879_v10, %v894_v12  ;;  %v903_v23 = vcombine.high %v879_v10, %v894_v12 }
 0x583   : > { %v910_v15 = vrot.slane %v902_v14, %v2912_v47  ;;  %v917_v16 = vrot.slane %v903_v23, %v2912_v47  ;;  %v918_v18 = vcombine.low %v886_v13, %v901_v27  ;;  %v919_v20 = vcombine.high %v886_v13, %v901_v27 }
 0x585   : > { %v926_v21 = vrot.slane %v918_v18, %v2912_v47  ;;  %v933_v22 = vrot.slane %v919_v20, %v2912_v47  ;;  %v938_v24 = vcombine.low %v910_v15, %v917_v16  ;;  %v1976_v25 = vcombine.high %v910_v15, %v917_v16 }
 0x587   : > { %v945_v26 = vrot.slane %v938_v24, %v2903_v35  ;;  %v953_v28 = vrot.slane %v1976_v25, %v2903_v35  ;;  %v954_v29 = vcombine.low %v926_v21, %v933_v22  ;;  %v1977_v30 = vcombine.high %v926_v21, %v933_v22  ;;  %v2275_v36 = vpop.eup %2274 }
 0x588   : > { %v2277_v39 = vpop.eup %2276  ;;  %v1116_v44 = vmul.f32 %v2275_v36, %v2271_v1 }
 0x589   : > { %v961_v31 = vrot.slane %v954_v29, %v2903_v35  ;;  %v969_v32 = vrot.slane %v1977_v30, %v2903_v35  ;;  %v970_v33 = vcombine.low %v945_v26, %v953_v28  ;;  %v1117_v45 = vmul.f32 %v2277_v39, %v2273_v2  ;;  %v2263_v2 = vld [vmem:[%s2851_s7] sm:$0xff]  }
 0x58a   : > { %v1118_v49 = vpack.c.bf16 %v1116_v44, %v1116_v44 }
 0x58b   : > { %v978_v34 = vcombine.low %v961_v31, %v969_v32  ;;  %v977_v37 = vrot.slane %v970_v33, %v2912_v47  ;;  %v1119_v50 = vpack.c.bf16 %v1117_v45, %v1117_v45 }
 0x58d   : > { %v985_v38 = vrot.slane %v978_v34, %v2912_v47 }
 0x58f   : > { %v986_v40 = vcombine.low %v977_v37, %v985_v38  ;;  %v987_v41 = vcombine.high %v977_v37, %v985_v38 }
 0x591   : > { %v1120_v42 = vpack.c.bf16 %v986_v40, %v986_v40  ;;  %v1121_v43 = vpack.c.bf16 %v987_v41, %v987_v41 }
 0x593   : > { %v1127_v46 = vsel %vm1125_vm5, %v1120_v42, 0  ;;  %v1173_v48 = vsel %vm1125_vm5, %v1121_v43, 0  ;;  %v2264_v42 = vld [vmem:[%s2856_s23 + $0x8] sm:$0xff]   ;;  %v2265_v43 = vld [vmem:[%s2856_s23] sm:$0xff]  }
 0x594   : > { %2067 = vmatpush3.bf16.msra.mxu1 %v1127_v46  ;;  %2073 = vmatpush3.bf16.msra.mxu0 %v1173_v48  ;;  %v1989_v48 = vld [vmem:[%s2831_s8 + $0x2] ss:$0 sm:$0xff] }
 0x595   : > { %2078 = vmatprep.subr.bf16.mxu1 %v2545_v17  ;;  %2086 = vmatprep.subr.bf16.mxu0 %v2545_v17 }
 0x597   : > { %2069 = vmatmul.mubr.msk.bf16.vlgmr.msra.gmra.mxu1 %vm1095_vm4, %v1118_v49  ;;  %2075 = vmatmul.mubr.msk.bf16.vlgmr.msra.gmra.mxu0 %vm1095_vm4, %v1119_v50  ;;  %v1990_v50 = vld [vmem:[%s2831_s8 + $0x3] ss:$0 sm:$0xff] }
 0x598   : > { %2082 = vmatprep.mubr.msk.bf16.mxu1 %vm2546_vm1, %v2545_v17  ;;  %2090 = vmatprep.mubr.msk.bf16.mxu0 %vm2546_vm1, %v2545_v17 }
 0x599   : > { %2079 = vmatpush3.bf16.msra.mxu1 %v2262_v51  ;;  %2087 = vmatpush3.bf16.msra.mxu0 %v2264_v42 }
 0x59a   : > { %2080 = vmatprep.subr.bf16.mxu1 %v2545_v17  ;;  %2088 = vmatprep.subr.bf16.mxu0 %v2545_v17 }
 0x59d   : > { %2081 = vmatpush3.bf16.msra.mxu1 %v2263_v2  ;;  %2089 = vmatpush3.bf16.msra.mxu0 %v2265_v43 }
 0x59e   : > { %2094 = vmatprep.subr.bf16.mxu1 %v2545_v17 }
 0x657   : > { %v1163_v52 = vpop.f32.mrf.mxu1  ;;  %v1209_v53 = vpop.f32.mrf.mxu0 }
 0x658   : > { %v1215_v54 = vcombine.high %v1163_v52, %v2545_v17  ;;  %v1222_v55 = vrot.slane %v1163_v52, %v2903_v35  ;;  %v1230_v56 = vcombine.high %v1209_v53, %v2545_v17  ;;  %v1237_v57 = vrot.slane %v1209_v53, %v2903_v35 }
 0x659   : > { %v2070_v58 = vpop.f32.mrf.mxu1  ;;  %v2076_v59 = vpop.f32.mrf.mxu0 }
 0x65a   : > { %v1229_v60 = vrot.slane %v1215_v54, %v2903_v35  ;;  %v1244_v61 = vrot.slane %v1230_v56, %v2903_v35  ;;  %v1245_v62 = vcombine.low %v1222_v55, %v1237_v57  ;;  %v1246_v63 = vcombine.high %v1222_v55, %v1237_v57  ;;  %v2266_v54 = vld [vmem:[%s2861_s18 + $0x18] sm:$0xff]   ;;  %v2267_v55 = vld [vmem:[%s2861_s18 + $0x10] sm:$0xff]   ;;  %v2268_v56 = vld [vmem:[%s2861_s18 + $0x8] sm:$0xff]  }
 0x65b   : > { %v1166_v0 = vpop.f32.mrf.mxu1  ;;  %v1212_v1 = vpop.f32.mrf.mxu0  ;;  %v2269_v57 = vld [vmem:[%s2861_s18] sm:$0xff]  }
 0x65c   : > { %v1253_v3 = vrot.slane %v1245_v62, %v2912_v47  ;;  %v1260_v4 = vrot.slane %v1246_v63, %v2912_v47  ;;  %v1261_v5 = vcombine.low %v1229_v60, %v1244_v61  ;;  %v1262_v6 = vcombine.high %v1229_v60, %v1244_v61  ;;  %v1991_v58 = vld [vmem:[%s2831_s8 + $0x4] ss:$0 sm:$0xff] }
 0x65d   : > { %v2071_v7 = vpop.f32.mrf.mxu1  ;;  %v2077_v8 = vpop.f32.mrf.mxu0 }
 0x65e   : > { %v1269_v9 = vrot.slane %v1261_v5, %v2912_v47  ;;  %v1276_v10 = vrot.slane %v1262_v6, %v2912_v47  ;;  %v1281_v11 = vcombine.low %v1253_v3, %v1260_v4  ;;  %v1983_v12 = vcombine.high %v1253_v3, %v1260_v4  ;;  %v1995_v6 = vld [vmem:[%s2831_s8 + $0x5] ss:$0 sm:$0xff] }
 0x660   : > { %v1288_v13 = vrot.slane %v1281_v11, %v2903_v35  ;;  %v1296_v27 = vrot.slane %v1983_v12, %v2903_v35  ;;  %v1297_v14 = vcombine.low %v1269_v9, %v1276_v10  ;;  %v1984_v23 = vcombine.high %v1269_v9, %v1276_v10 }
 0x662   : > { %v1304_v15 = vrot.slane %v1297_v14, %v2903_v35  ;;  %v1312_v16 = vrot.slane %v1984_v23, %v2903_v35  ;;  %v1313_v18 = vcombine.low %v1288_v13, %v1296_v27  ;;  %v1985_v35 = vld [vmem:[%s2831_s8 + $0x1] ss:$0 sm:$0xff] }
 0x664   : > { %v1321_v20 = vcombine.low %v1304_v15, %v1312_v16  ;;  %v1320_v21 = vrot.slane %v1313_v18, %v2912_v47 }
 0x666   : > { %v1328_v22 = vrot.slane %v1321_v20, %v2912_v47 }
 0x668   : > { %v1330_v24 = vcombine.high %v1320_v21, %v1328_v22  ;;  %v1329_v25 = vcombine.low %v1320_v21, %v1328_v22  ;;  %v2001_v22 = vld [vmem:[%s2831_s8 + $0x6] ss:$0 sm:$0xff] }
 0x66a   : > { %1332 = vrot.lane.b32.xlu1 %v1330_v24, %s2552_s1 }
 0x6dc   : > { %v1333_v26 = vpop.permute.xlu1 %1332 }
 0x6dd   : > { %v1335_v28 = vsel %vm992_vm3, %v1329_v25, %v1333_v26  ;;  %v2002_v25 = vld [vmem:[%s2831_s8 + $0x7] ss:$0 sm:$0xff]  ;;  %s3169_s8 = sld [smem:[#allocation31_spill]] (!%p2003_p1) }
 0x6de   : > { %v1336_v29 = vpack.c.bf16 %v1335_v28, %v1335_v28 }
 0x6e0   : > { %2083 = vmatmul.mubr.msk.bf16.vlgmr.msra.gmra.mxu1 %vm580_vm2, %v1336_v29 }
 0x6e1   : > { %2102 = vmatprep.mubr.msk.bf16.mxu1 %vm2546_vm1, %v2545_v17  ;;  %2095 = vmatpush3.bf16.msra.mxu1 %v2266_v54 }
 0x6e2   : > { %2096 = vmatprep.subr.bf16.mxu1 %v2545_v17 }
 0x6e5   : > { %2097 = vmatpush3.bf16.msra.mxu1 %v2267_v55 }
 0x6e6   : > { %2098 = vmatprep.subr.bf16.mxu1 %v2545_v17 }
 0x6e9   : > { %2099 = vmatpush3.bf16.msra.mxu1 %v2268_v56 }
 0x6ea   : > { %2100 = vmatprep.subr.bf16.mxu1 %v2545_v17 }
 0x6ed   : > { %2101 = vmatpush3.bf16.msra.mxu1 %v2269_v57 }
 0x7a0   : > { %v1395_v30 = vpop.f32.mrf.mxu1 }
 0x7a1   : > { %v1396_v31 = vadd.f32 %v1985_v35, %v1395_v30 }
 0x7a2   : > { %v2084_v32 = vpop.f32.mrf.mxu1 }
 0x7a3   : > { %v1401_v47 = vadd.f32 %v1396_v31, %v2880_v19 }
 0x7a4   : > { %v1398_v33 = vpop.f32.mrf.mxu1 }
 0x7a5   : > { %v1404_v34 = vsel %vm580_vm2, %v1401_v47, 0.0 }
 0x7a6   : > { %1405 = vadd.xlane.f32.xlu0 %v1404_v34  ;;  %v2085_v36 = vpop.f32.mrf.mxu1 }
 0x82f   : > { %v1406_v37 = vpop.xlane.xlu0 %1405 }
 0x830   : > { %v1408_v38 = vmul.f32 0.03125, %v1406_v37 }
 0x832   : > { %v1409_v39 = vsub.f32 %v1401_v47, %v1408_v38 }
 0x834   : > { %v1410_v40 = vmul.f32 %v1409_v39, %v1409_v39 }
 0x836   : > { %v1411_v41 = vsel %vm580_vm2, %v1410_v40, 0.0 }
 0x837   : > { %1412 = vadd.xlane.f32.xlu1 %v1411_v41 }
 0x8c0   : > { %v1413_v19 = vpop.xlane.xlu1 %1412 }
 0x8c1   : > { %v1414_v44 = vmul.f32 0.03125, %v1413_v19 }
 0x8c3   : > { %v1415_v45 = vadd.f32 1e-05, %v1414_v44 }
 0x8c5   : > { %2278 = vrsqrt.f32 %v1415_v45 }
 0x8d2   : > { %v2279_v46 = vpop.eup %2278 }
 0x8d3   : > { %v1417_v49 = vmul.f32 %v2279_v46, %v1409_v39 }
 0x8d5   : > { %v1422_v51 = vmul.f32 %v1989_v48, %v1417_v49 }
 0x8d7   : > { %v1427_v52 = vadd.f32 %v1990_v50, %v1422_v51 }
 0x8d9   : > { %v1428_v53 = vpack.c.bf16 %v1427_v52, %v1427_v52 }
 0x8db   : > { %2091 = vmatmul.mubr.msk.bf16.vlgmr.msra.gmra.mxu0 %vm580_vm2, %v1428_v53 }
 0x99b   : > { %v1487_v59 = vpop.f32.mrf.mxu0 }
 0x99c   : > { %v1488_v60 = vadd.f32 %v1991_v58, %v1487_v59 }
 0x99d   : > { %v2092_v61 = vpop.f32.mrf.mxu0 }
 0x99e   : > { %v1494_v62 = vmul.f32 0.70710677, %v1488_v60  ;;  %v1493_v2 = vmul.f32 0.5, %v1488_v60 }
 0x99f   : > { %v1490_v63 = vpop.f32.mrf.mxu0 }
 0x9a0   : > { %2280 = verf.f32 %v1494_v62 }
 0x9a1   : > { %v2093_v0 = vpop.f32.mrf.mxu0 }
 0x9ad   : > { %v2281_v1 = vpop.eup %2280 }
 0x9ae   : > { %v1496_v3 = vadd.f32 1.0, %v2281_v1 }
 0x9b0   : > { %v1497_v4 = vmul.f32 %v1496_v3, %v1493_v2 }
 0x9b2   : > { %v1498_v5 = vpack.c.bf16 %v1497_v4, %v1497_v4 }
 0x9b4   : > { %2103 = vmatmul.mubr.msk.bf16.vlgmr.msra.gmra.mxu1 %vm1536_vm6, %v1498_v5 }
 0xa74   : > { %v1574_v17 = vpop.f32.mrf.mxu1 }
 0xa75   : > { %v1575_v7 = vadd.f32 %v1995_v6, %v1574_v17 }
 0xa76   : > { %v2104_v8 = vpop.f32.mrf.mxu1 }
 0xa77   : > { %v1580_v9 = vadd.f32 %v1575_v7, %v1427_v52 }
 0xa78   : > { %v1577_v10 = vpop.f32.mrf.mxu1 }
 0xa79   : > { %v1583_v11 = vsel %vm580_vm2, %v1580_v9, 0.0 }
 0xa7a   : > { %1584 = vadd.xlane.f32.xlu0 %v1583_v11  ;;  %v2105_v12 = vpop.f32.mrf.mxu1 }
 0xb03   : > { %v1585_v13 = vpop.xlane.xlu0 %1584 }
 0xb04   : > { %v1586_v27 = vmul.f32 0.03125, %v1585_v13 }
 0xb06   : > { %v1587_v14 = vsub.f32 %v1580_v9, %v1586_v27 }
 0xb08   : > { %v1588_v23 = vmul.f32 %v1587_v14, %v1587_v14 }
 0xb0a   : > { %v1589_v15 = vsel %vm580_vm2, %v1588_v23, 0.0 }
 0xb0b   : > { %1590 = vadd.xlane.f32.xlu0 %v1589_v15 }
 0xb94   : > { %v1591_v16 = vpop.xlane.xlu0 %1590 }
 0xb95   : > { %v1592_v18 = vmul.f32 0.03125, %v1591_v16 }
 0xb97   : > { %v1593_v20 = vadd.f32 1e-05, %v1592_v18 }
 0xb99   : > { %2282 = vrsqrt.f32 %v1593_v20 }
 0xba6   : > { %v2283_v21 = vpop.eup %2282 }
 0xba7   : > { %v1595_v24 = vmul.f32 %v2283_v21, %v1587_v14 }
 0xba9   : > { %v1600_v26 = vmul.f32 %v2001_v22, %v1595_v24  ;;  %1610 = sbr.rel (%p2003_p1) target bundleno = 3708 (0xe7c), region = 80 }
 0xbab   : > { %v1605_v28 = vadd.f32 %v2002_v25, %v1600_v26 }
 0xbad   : > { %1606 = vst.msk [vmem:[#allocation2] sm:$0xff] %vm580_vm2, %v1605_v28 }
 0xbae   : > { %v2553_v29 = vmov 0.0   ;;  %v2285_v35 = vld [vmem:[#allocation9 + $0x14] ss:$8 sps:$4 sm:$0xff]   ;;  %vm2554_vm7 = vmmov 0   ;;  %v2286_v30 = vld [vmem:[#allocation9 + $0x4] ss:$8 sps:$4 sm:$0xff]   ;;  %v1611_v31 = vpack.c.bf16 %v1605_v28, %v1605_v28 }
 0xbaf   : > { %2106 = vmatprep.subr.bf16.mxu0 %v2553_v29  ;;  %2110 = vmatprep.mubr.msk.bf16.mxu0 %vm2554_vm7, %v2553_v29  ;;  %v2287_v32 = vld [vmem:[#allocation9 + $0x10] ss:$8 sps:$4 sm:$0xff]   ;;  %v2288_v47 = vld [vmem:[#allocation9] ss:$8 sps:$4 sm:$0xff]   ;;  %vm1737_vm8 = vcmask 1040384   ;;  %v2555_v52 = vmov 0  }
 0xbb0   : > { %2114 = vmatprep.subr.bf16.mxu1 %v2553_v29  ;;  %2118 = vmatprep.mubr.msk.bf16.mxu1 %vm2554_vm7, %v2553_v29  ;;  %v1616_v33 = vld [vmem:[%s3169_s8 + $0x2] sm:$0x1]  ;;  %v1678_v42 = vld [vmem:[%s3169_s8 + $0x3] sm:$0x1]  ;;  %v1735_v45 = vld [vmem:[%s3169_s8 + $0x4] sm:$0x1] }
 0xbb1   : > { %2107 = vmatpush3.bf16.msra.mxu0 %v2285_v35  ;;  %2115 = vmatpush3.bf16.msra.mxu1 %v2287_v32  ;;  %v1741_v53 = vld [vmem:[%s3169_s8 + $0x5] sm:$0x1] }
 0xbb2   : > { %2108 = vmatprep.subr.bf16.mxu0 %v2553_v29  ;;  %2116 = vmatprep.subr.bf16.mxu1 %v2553_v29 }
 0xbb3   : > { %2284 = vset.pattern.permute.xlu0 %v2555_v52 }
 0xbb5   : > { %2109 = vmatpush3.bf16.msra.mxu0 %v2286_v30  ;;  %2117 = vmatpush3.bf16.msra.mxu1 %v2288_v47 }
 0xbb8   : > { %2111 = vmatmul.mubr.msk.bf16.vlgmr.msra.gmra.mxu0 %vm580_vm2, %v1611_v31 }
 0xc78   : > { %v1666_v34 = vpop.f32.mrf.mxu0 }
 0xc79   : > { %v1667_v36 = vadd.f32 %v1666_v34, %v1616_v33 }
 0xc7a   : > { %v2112_v37 = vpop.f32.mrf.mxu0 }
 0xc7b   : > { %2289 = vtanh.f32 %v1667_v36 }
 0xc7c   : > { %v1669_v38 = vpop.f32.mrf.mxu0 }
 0xc7e   : > { %v2113_v39 = vpop.f32.mrf.mxu0 }
 0xc88   : > { %v2290_v40 = vpop.eup %2289 }
 0xc89   : > { %v1673_v41 = vpack.c.bf16 %v2290_v40, %v2290_v40 }
 0xc8b   : > { %2119 = vmatmul.mubr.msk.bf16.vlgmr.msra.gmra.mxu1 %vm580_vm2, %v1673_v41 }
 0xd4b   : > { %v1728_v43 = vpop.f32.mrf.mxu1 }
 0xd4c   : > { %v1729_v19 = vadd.f32 %v1728_v43, %v1678_v42 }
 0xd4d   : > { %v2120_v44 = vpop.f32.mrf.mxu1 }
 0xd4e   : > { %v1734_v46 = vmax.f32 %v1729_v19, 0.0 }
 0xd4f   : > { %v1731_v48 = vpop.f32.mrf.mxu1 }
 0xd50   : > { %v1736_v49 = vmul.f32 %v1735_v45, %v1734_v46 }
 0xd51   : > { %v2121_v50 = vpop.f32.mrf.mxu1 }
 0xd52   : > { %v1738_v51 = vsel %vm1737_vm8, %v1736_v49, 0.0 }
 0xd53   : > { %1739 = vadd.xlane.f32.xlu0 %v1738_v51 }
 0xddc   : > { %v1740_v54 = vpop.xlane.xlu0 %1739 }
 0xddd   : > { %v1742_v55 = vadd.f32 %v1741_v53, %v1740_v54 }
 0xddf   : > { %v2010_v56 = vmul.f32 -1.442695, %v1742_v55 }
 0xde1   : > { %2291 = vpow2.f32 %v2010_v56 }
 0xdee   : > { %v2292_v57 = vpop.eup %2291 }
 0xdef   : > { %v1746_v58 = vadd.f32 1.0, %v2292_v57 }
 0xdf1   : > { %2293 = vrcp.f32 %v1746_v58 }
 0xdfe   : > { %v2294_v59 = vpop.eup %2293 }
 0xdff   : > { %1751 = vperm.xlu0 %2284, %v2294_v59  }
 0xe7a   : > { %v1752_v60 = vpop.permute.xlu0 %1751 }
 0xe7b   : > { %1754 = vst [vmem:[%s501_s4] sm:$0x1] %v1752_v60 }
 0xe7c PF: > { %s3170_s23 = sld [smem:[#allocation18_spill]]  ;;  %s1768_s30 = sshll.u32 %s501_s4, 4  ;;  %s1769_s30 = int_to_ptr.vmem [resolvable:$true] %s1768_s30 }
 0xe7d   : > { %s3171_s6 = sld [smem:[#allocation20_spill]]  ;;  %s1756_s22 = scalar_lea.sflag [#allocation5], %s2816_s28 }
 0xe7e   : > { %s3172_s26 = sld [smem:[#allocation32_spill]]  ;;  %s2405_s27 = scalar_lea.vmem %s1769_s30, 16 }
 0xe7f   : > { %p2406_p12 = scmp.ne.s32.totalorder %s1769_s30, %s2405_s27  ;;  %s2556_s1 = smov [#allocation11]  }
 0xe80   : > { %s2409_s15 = sshll.u32 %s2556_s1, 4  ;;  %s2410_s15 = int_to_ptr.vmem [resolvable:$false] %s2409_s15 }
 0xe81   : > { %s2411_s18 = scalar_lea.vmem %s2410_s15, 32  ;;  %p2412_p5 = scmp.lt.s32.totalorder %s1769_s30, %s2410_s15 }
 0xe82   : > { %s2011_s12 = sshll.u32 %s3170_s23, 4  ;;  %p2413_p9 = scmp.lt.s32.totalorder %s2411_s18, %s2405_s27 }
 0xe83   : > { %p3173_p4 = scmp.ne.s32.totalorder %s3171_s6, 0 }
 0xe84   : > { %s1766_s3 = scalar_lea.hbm %s3172_s26, %s2011_s12  ;;  %p2414_p10 = por %p2413_p9, %p2412_p5 }
 0xe85   : > { %p2407_p2 = pnand %p2406_p12, %p3173_p4 }
 0xe87   : > { %p2408_p8 = pneg %p2407_p2 }
 0xe89   : > { %p2415_p11 = pnand %p2414_p10, %p2408_p8 }
 0xe8b   : > { %2418 = shalt.err (!%p2415_p11)
}
 0xe8c   : > { %s2419_s8 = scalar_lea.hbm %s1766_s3, 16  ;;  %s2423_s16 = scalar_lea.hbm %s3172_s26, 32 }
 0xe8d   : > { %p2420_p3 = scmp.ne.s32.totalorder %s1766_s3, %s2419_s8  ;;  %p2424_p13 = scmp.lt.s32.totalorder %s1766_s3, %s3172_s26 }
 0xe8e   : > { %p2425_p0 = scmp.lt.s32.totalorder %s2423_s16, %s2419_s8 }
 0xe8f   : > { %p2421_p6 = pnand %p2420_p3, %p3173_p4 }
 0xe90   : > { %p2426_p1 = por %p2425_p0, %p2424_p13 }
 0xe91   : > { %p2422_p7 = pneg %p2421_p6 }
 0xe93   : > { %p2427_p12 = pnand %p2426_p1, %p2422_p7 }
 0xe95   : > { %2430 = shalt.err (!%p2427_p12)
}
 0xe96   : > { %2132 = dma.vmem_to_hbm [thread:$0]  (%p3173_p4), %s1769_s30, 16, %s1766_s3, %s1756_s22  }
 0xe97 PF: > { %s3174_s25 = sld [smem:[#allocation17_spill]]  ;;  %p2155_p2 = scmp.ge.s32.totalorder %s2537_s19, 2 }
 0xe98   : > { %s3175_s20 = sld [smem:[#allocation21_spill]] }
 0xe9d   : > { %s1780_s0 = sand.u32 1, %s3174_s25  }
 0xe9e   : > { %p3176_p8 = scmp.ne.s32.totalorder %s3175_s20, 0  ;;  %s1781_s23 = scalar_lea.sflag [#allocation5], %s1780_s0 }
 0xea0   : > { %p2149_p5 = pnand %p2155_p2, %p3176_p8 }
 0xea2   : > { %p2150_p9 = pneg %p2149_p5 }
 0xea4   : > { %2492 = dma.done.wait (%p2150_p9), %s1781_s23, 16  }
 0xea5   : > { %2494 = vsyncadd (%p2150_p9), %s1781_s23, 4294967280  ;;  %s29_s19 = sadd.s32 1, %s2537_s19   ;;  %s3177_s16 = sld [smem:[#allocation19_spill]] }
 0xea6   : > { %p26_p10 = scmp.ge.s32.totalorder %s29_s19, 6   ;;  %s3178_s6 = sld [smem:[#allocation22_spill]] }
 0xea7   : > { %s3179_s18 = sld [smem:[#allocation23_spill]]  ;;  %s3180_s30 = smov %s2501_s10 }
 0xea8   : > { %s3181_s10 = smov %s2505_s11  ;;  %s3182_s11 = smov %s2787_s9 }
 0xea9   : > { %s3183_s12 = smov %s2513_s13  ;;  %s3184_s13 = smov %s2517_s14 }
 0xeaa   : > { %s3185_s14 = smov %s2795_s21  ;;  %s3186_s15 = smov %s2529_s17 }
 0xeab   :  { %28 = sbr.rel (!%p26_p10) target bundleno = 22 (0x16), region = 149 }
 0xeac   : > { %s3187_s17 = smov %s3178_s6 }
 0xeb0   :  { %1785 = vsyncpa [#allocation4], 1 }
 0xeb1   :  { %1787 = vsyncpa [#allocation4 + $0x1], 1 }
 0xeb2   :  { %1788 = vsyncpa [#allocation7], 1 }
 0xeb3   :  { %1790 = vsyncpa [#allocation7 + $0x1], 1 }
 0xeb4   :  { %1791 = vsyncpa [#allocation10], 1 }
 0xeb5   :  { %1792 = vsyncpa [#allocation5], 1 }
 0xeb6   :  { %1794 = vsyncpa [#allocation5 + $0x1], 1 }

</bundles_post_ra>
